<compile_context>
chip_gen: v7x
topology: tpu7x:2x2x1
jax: 0.10.0
libtpu: 0.0.40
codegen_flags: <defaults>
</compile_context>

<pallas_src>
import jax
import jax.numpy as jnp
import numpy as np
from jax.experimental import pallas as pl
from jax.experimental.pallas import tpu as pltpu


def _round_up(n, m):
    return ((n + m - 1) // m) * m


# ------------------------------- wrapper + kernel ----------------------------

def duration_discriminator_v1(x, x_mask, dur_r, dur_hat, params,
                              compute_dtype=jnp.float32):
    """x: (B, T, Cin), x_mask/dur_r/dur_hat: (B, T, 1). Returns [prob_r, prob_hat]."""
    B, T, Cin = x.shape
    w1, b1, w2, b2, wd, bd, wp1, bp1, wp2, bp2, wo, bo = params
    K, _, F = w1.shape
    PAD = K // 2
    OFF = _round_up(2 * PAD, 8)               # interior offset; >= 2*PAD (composed shifts)
    Tp = _round_up(OFF + T + 2 * PAD, 8)
    Fp = _round_up(F, 128)
    Cp = _round_up(Cin + 3, 128)              # x channels + [mask, dur_r, dur_hat]
    cdt = compute_dtype
    f32 = jnp.float32

    # --- fold all input-independent linear algebra once, outside the kernel ------
    wp1_h, wp1_d = wp1[:, :F, :], wp1[:, F:, :]
    wdur = jnp.einsum("c,kcf->kf", wd[0, 0], wp1_d)          # (K, F)  dur path weights
    bdur = jnp.einsum("c,kcf->kf", bd[0], wp1_d)             # (K, F)  dur-proj bias path
    wo2 = jnp.einsum("kfg,go->kf", wp2, wo)                  # (K, F)  = wp2[k] @ wo
    sd = (wdur @ wo2.T).astype(f32)                          # (K, K)  sd[k1, k2]
    sb = (bdur @ wo2.T).astype(f32)                          # (K, K)  sb[k1, k2]
    scal = jnp.concatenate([sd.reshape(-1), sb.reshape(-1),
                            (bp2 @ wo).reshape(-1),
                            bo.reshape(-1)]).astype(f32).reshape(1, -1)   # (1, 2K^2+2)

    def padF(a, axes):
        pads = [(0, 0)] * a.ndim
        for ax in axes:
            pads[ax] = (0, Fp - a.shape[ax])
        return jnp.pad(a, pads)

    w1p = jnp.pad(w1, ((0, 0), (0, Cp - Cin), (0, Fp - F))).astype(cdt)   # (K, Cp, Fp)
    b1p = padF(b1, [1])                                                   # (1, Fp) f32
    w2p = padF(w2, [1, 2]).astype(cdt)                                    # (K, Fp, Fp)
    b2p = padF(b2, [1])
    wphp = padF(wp1_h, [1, 2]).astype(cdt)                                # (K, Fp, Fp)
    bp1p = padF(bp1, [1])
    wo2p = jnp.pad(wo2.T, ((0, Fp - F), (0, 0))).astype(cdt)              # (Fp, K)
    weights = (w1p, b1p, w2p, b2p, wphp, bp1p, wo2p)

    # --- pack x + mask + durations into one lane-dense, time-haloed block --------
    packed = jnp.concatenate([x, x_mask, dur_r, dur_hat], axis=-1)        # (B, T, Cin+3)
    packed = jnp.pad(packed, ((0, 0), (OFF, Tp - OFF - T), (0, Cp - (Cin + 3))))

    def kernel(x_ref, sc_ref, w1_ref, b1_ref, w2_ref, b2_ref,
               wph_ref, bp1_ref, wo2_ref, out_ref):
        KK = K * K

        def sval(i):
            return sc_ref[0:1, i:i + 1]                     # (1,1) folded constant

        def shifted(v, s):
            # shifted(v, s)[j] == v[(j + s) % Tp]; pure XLU sublane rotate on f32 data.
            if s % Tp == 0:
                return v
            return pltpu.roll(v, (-s) % Tp, axis=0)

        def conv(act, w_ref):
            """'same' K-tap conv: K full-height aligned matmuls + sublane shifts."""
            a = act.astype(cdt)                             # one cast per conv
            acc = jnp.zeros((Tp, w_ref.shape[2]), f32)
            for k in range(K):
                y = jnp.dot(a, w_ref[k], preferred_element_type=f32)   # (Tp, Fout) f32
                acc = acc + shifted(y, k - PAD)
            return acc

        blk = x_ref[0]                                      # (Tp, Cp), zero halo rows
        maskP = blk[:, Cin:Cin + 1]                         # (Tp, 1)
        durm = blk[:, Cin + 1:Cin + 3] * maskP              # (Tp, 2) [dur_r, dur_hat]*mask

        # trunk: h = conv_2(conv_1(x*mask)*mask); zero weight rows of w1p absorb the
        # packed mask/dur channels, so (blk*mask) feeds conv_1 directly.
        a1 = (conv(blk * maskP, w1_ref) + b1_ref[...]) * maskP
        a2 = (conv(a1, w2_ref) + b2_ref[...]) * maskP

        # shared (h-channel) half of pre_out_conv_1, masked for the next stage.
        phm = (conv(a2, wph_ref) + bp1_ref[...]) * maskP

        # pre_out_conv_2 folded into the output Linear: all K tap columns in ONE
        # (Tp,Fp)@(Fp,K) matmul, combined with tiny column shifts.
        L = jnp.dot(phm.astype(cdt), wo2_ref[...], preferred_element_type=f32)  # (Tp, K)
        logit = jnp.zeros((Tp, 1), f32)
        for k2 in range(K):
            logit = logit + shifted(L[:, k2:k2 + 1], k2 - PAD)

        # dur_proj (+ its bias) through pre_out_conv_1/2/output_layer == K*K scalars
        # applied to shifted mask / (dur*mask) columns; both durations at once.
        mS = {s: shifted(maskP, s) for s in range(-2 * PAD, 2 * PAD + 1)}
        dS = {s: shifted(durm, s) for s in range(-2 * PAD, 2 * PAD + 1)}
        dur_extra = jnp.zeros((Tp, 2), f32)
        for k2 in range(K):
            acc_b = jnp.zeros((Tp, 1), f32)
            acc_d = jnp.zeros((Tp, 2), f32)
            for k1 in range(K):
                s = k1 + k2 - 2 * PAD
                acc_b = acc_b + sval(KK + k1 * K + k2) * mS[s]
                acc_d = acc_d + sval(k1 * K + k2) * dS[s]
            logit = logit + mS[k2 - PAD] * acc_b
            dur_extra = dur_extra + mS[k2 - PAD] * acc_d

        logits = logit + sval(2 * KK) + dur_extra           # (Tp, 2)  (+ bp2 @ wo)
        probs = jax.nn.sigmoid(maskP * logits + sval(2 * KK + 1))
        out_ref[0] = probs[OFF:OFF + T, :].astype(out_ref.dtype)

    def const_spec(a):
        return pl.BlockSpec(a.shape, lambda b, _nd=a.ndim: (0,) * _nd)

    out = pl.pallas_call(
        kernel,
        grid=(B,),
        in_specs=[pl.BlockSpec((1, Tp, Cp), lambda b: (b, 0, 0)),
                  const_spec(scal)] + [const_spec(a) for a in weights],
        out_specs=pl.BlockSpec((1, T, 2), lambda b: (b, 0, 0)),
        out_shape=jax.ShapeDtypeStruct((B, T, 2), jnp.float32),
        compiler_params=pltpu.CompilerParams(
            dimension_semantics=("parallel",),
            vmem_limit_bytes=32 * 1024 * 1024),
    )(packed, scal, *weights)
    # TODO(synk): for B<=2 with very long T on v7x, add a T-tile "parallel" grid axis
    # (overlapping 2*PAD halo) to use both TensorCores and bound VMEM; unnecessary here.
    return [out[:, :, 0:1], out[:, :, 1:2]]


# --------------------------- parameter init ---------------------------------

def init_params(key, in_channels, filter_channels, kernel_size):
    F_, K = filter_channels, kernel_size
    keys = jax.random.split(key, 12)

    def w(k, shape, scale=0.1):
        return scale * jax.random.normal(k, shape, jnp.float32)

    w1 = w(keys[0], (K, in_channels, F_));  b1 = w(keys[1], (1, F_))
    w2 = w(keys[2], (K, F_, F_));           b2 = w(keys[3], (1, F_))
    wd = w(keys[4], (1, 1, F_));            bd = w(keys[5], (1, F_))
    wp1 = w(keys[6], (K, 2 * F_, F_));      bp1 = w(keys[7], (1, F_))
    wp2 = w(keys[8], (K, F_, F_));          bp2 = w(keys[9], (1, F_))
    wo = w(keys[10], (F_, 1));              bo = w(keys[11], (1, 1))
    return (w1, b1, w2, b2, wd, bd, wp1, bp1, wp2, bp2, wo, bo)


# ----------------------------- JAX reference ---------------------------------

def _conv1d_ref(x, w, b):
    out = jax.lax.conv_general_dilated(
        x, w, window_strides=(1,), padding="SAME",
        dimension_numbers=("NWC", "WIO", "NWC"))
    return out + b


def reference(x, mask, dur_r, dur_hat, params):
    w1, b1, w2, b2, wd, bd, wp1, bp1, wp2, bp2, wo, bo = params
    h = _conv1d_ref(x * mask, w1, b1)
    h = _conv1d_ref(h * mask, w2, b2)
    outs = []
    for dur in (dur_r, dur_hat):
        dp = jnp.einsum("bti,kio->bto", dur, wd) + bd
        cat = jnp.concatenate([h, dp], axis=-1)
        p = _conv1d_ref(cat * mask, wp1, bp1)
        p = _conv1d_ref(p * mask, wp2, bp2)
        p = p * mask
        outs.append(jax.nn.sigmoid(p @ wo + bo))
    return outs


# --------------------------------- main --------------------------------------

if __name__ == "__main__":
    B, T = 2, 16
    in_channels, filter_channels, kernel_size = 4, 32, 3

    key = jax.random.PRNGKey(0)
    k1, k2, k3, kp = jax.random.split(key, 4)

    x = jax.random.normal(k1, (B, T, in_channels), jnp.float32)
    lengths = jnp.array([16, 12])
    t = jnp.arange(T)
    x_mask = (t[None, :] < lengths[:, None]).astype(jnp.float32)[..., None]  # (B,T,1)
    dur_r = jnp.abs(jax.random.normal(k2, (B, T, 1), jnp.float32))
    dur_hat = jnp.abs(jax.random.normal(k3, (B, T, 1), jnp.float32))

    params = init_params(kp, in_channels, filter_channels, kernel_size)

    # f32 path: matches the pure-JAX reference tightly (validates all the algebraic folds).
    out_r, out_h = duration_discriminator_v1(x, x_mask, dur_r, dur_hat, params)
    jax.block_until_ready((out_r, out_h))
    ref_r, ref_h = reference(x, x_mask, dur_r, dur_hat, params)
    np.testing.assert_allclose(np.asarray(out_r), np.asarray(ref_r), rtol=5e-4, atol=5e-5)
    np.testing.assert_allclose(np.asarray(out_h), np.asarray(ref_h), rtol=5e-4, atol=5e-5)

    # bf16-at-the-MXU path (worthwhile on v5e/v6e/v7x): f32 accumulation; the 5e-2 atol
    # is the expected tolerance for bf16-cast weights.
    bf_r, bf_h = duration_discriminator_v1(x, x_mask, dur_r, dur_hat, params,
                                           compute_dtype=jnp.bfloat16)
    jax.block_until_ready((bf_r, bf_h))
    np.testing.assert_allclose(np.asarray(bf_r), np.asarray(ref_r), rtol=0, atol=5e-2)
    np.testing.assert_allclose(np.asarray(bf_h), np.asarray(ref_h), rtol=0, atol=5e-2)

    print("KERNEL_OK")
</pallas_src>

<mosaic_0001>
module attributes {stable_mosaic.version = 11 : i64} {
  func.func @kernel(%arg0: i32, %arg1: memref<1x32x128xf32, #tpu.memory_space<vmem>>, %arg2: memref<1x20xf32, #tpu.memory_space<vmem>>, %arg3: memref<3x128x128xf32, #tpu.memory_space<vmem>>, %arg4: memref<1x128xf32, #tpu.memory_space<vmem>>, %arg5: memref<3x128x128xf32, #tpu.memory_space<vmem>>, %arg6: memref<1x128xf32, #tpu.memory_space<vmem>>, %arg7: memref<3x128x128xf32, #tpu.memory_space<vmem>>, %arg8: memref<1x128xf32, #tpu.memory_space<vmem>>, %arg9: memref<128x3xf32, #tpu.memory_space<vmem>>, %arg10: memref<1x16x2xf32, #tpu.memory_space<vmem>>) attributes {dimension_semantics = [#tpu.dimension_semantics<parallel>], iteration_bounds = array<i64: 2>, scalar_prefetch = 0 : i64, scratch_operands = 0 : i64, tpu.core_type = #tpu.core_type<tc>, window_params = [{transform_indices = @transform_0, window_bounds = array<i64: 1, 32, 128>}, {pipeline_mode = #tpu.pipeline_mode<synchronous>, transform_indices = @transform_1, window_bounds = array<i64: 1, 20>}, {pipeline_mode = #tpu.pipeline_mode<synchronous>, transform_indices = @transform_2, window_bounds = array<i64: 3, 128, 128>}, {pipeline_mode = #tpu.pipeline_mode<synchronous>, transform_indices = @transform_3, window_bounds = array<i64: 1, 128>}, {pipeline_mode = #tpu.pipeline_mode<synchronous>, transform_indices = @transform_4, window_bounds = array<i64: 3, 128, 128>}, {pipeline_mode = #tpu.pipeline_mode<synchronous>, transform_indices = @transform_5, window_bounds = array<i64: 1, 128>}, {pipeline_mode = #tpu.pipeline_mode<synchronous>, transform_indices = @transform_6, window_bounds = array<i64: 3, 128, 128>}, {pipeline_mode = #tpu.pipeline_mode<synchronous>, transform_indices = @transform_7, window_bounds = array<i64: 1, 128>}, {pipeline_mode = #tpu.pipeline_mode<synchronous>, transform_indices = @transform_8, window_bounds = array<i64: 128, 3>}, {transform_indices = @transform_9, window_bounds = array<i64: 1, 16, 2>}]} {
    %c0 = arith.constant 0 : index
    %c0_0 = arith.constant 0 : index
    %c0_1 = arith.constant 0 : index
    %0 = vector.load %arg1[%c0, %c0_0, %c0_1] : memref<1x32x128xf32, #tpu.memory_space<vmem>>, vector<1x32x128xf32>
    %1 = vector.shape_cast %0 : vector<1x32x128xf32> to vector<32x128xf32>
    %2 = vector.extract_strided_slice %1 {offsets = [0, 4], sizes = [32, 1], strides = [1, 1]} : vector<32x128xf32> to vector<32x1xf32>
    %3 = vector.extract_strided_slice %1 {offsets = [0, 5], sizes = [32, 2], strides = [1, 1]} : vector<32x128xf32> to vector<32x2xf32>
    %4 = vector.broadcast %2 : vector<32x1xf32> to vector<32x2xf32>
    %5 = arith.mulf %3, %4 : vector<32x2xf32>
    %6 = vector.broadcast %2 : vector<32x1xf32> to vector<32x128xf32>
    %7 = arith.mulf %1, %6 : vector<32x128xf32>
    %cst = arith.constant 0.000000e+00 : f32
    %8 = vector.broadcast %cst : f32 to vector<32x128xf32>
    %c0_2 = arith.constant 0 : index
    %c0_3 = arith.constant 0 : index
    %c0_4 = arith.constant 0 : index
    %9 = vector.load %arg3[%c0_2, %c0_3, %c0_4] : memref<3x128x128xf32, #tpu.memory_space<vmem>>, vector<1x128x128xf32>
    %10 = vector.shape_cast %9 : vector<1x128x128xf32> to vector<128x128xf32>
    %cst_5 = arith.constant dense<0.000000e+00> : vector<32x128xf32>
    %11 = tpu.matmul %7, %10, %cst_5 {dimension_numbers = #tpu.dot_dimension_numbers<[1], [0], [0], [1], [0, 0, 1, 1], [], []>} : vector<32x128xf32>, vector<128x128xf32>, vector<32x128xf32> -> vector<32x128xf32>
    %c1_i32 = arith.constant 1 : i32
    %12 = tpu.dynamic_rotate %11 by %c1_i32 dim 0 : vector<32x128xf32>, i32 -> vector<32x128xf32>
    %13 = arith.addf %8, %12 : vector<32x128xf32>
    %c1 = arith.constant 1 : index
    %c0_6 = arith.constant 0 : index
    %c0_7 = arith.constant 0 : index
    %14 = vector.load %arg3[%c1, %c0_6, %c0_7] : memref<3x128x128xf32, #tpu.memory_space<vmem>>, vector<1x128x128xf32>
    %15 = vector.shape_cast %14 : vector<1x128x128xf32> to vector<128x128xf32>
    %cst_8 = arith.constant dense<0.000000e+00> : vector<32x128xf32>
    %16 = tpu.matmul %7, %15, %cst_8 {dimension_numbers = #tpu.dot_dimension_numbers<[1], [0], [0], [1], [0, 0, 1, 1], [], []>} : vector<32x128xf32>, vector<128x128xf32>, vector<32x128xf32> -> vector<32x128xf32>
    %17 = arith.addf %13, %16 : vector<32x128xf32>
    %c2 = arith.constant 2 : index
    %c0_9 = arith.constant 0 : index
    %c0_10 = arith.constant 0 : index
    %18 = vector.load %arg3[%c2, %c0_9, %c0_10] : memref<3x128x128xf32, #tpu.memory_space<vmem>>, vector<1x128x128xf32>
    %19 = vector.shape_cast %18 : vector<1x128x128xf32> to vector<128x128xf32>
    %cst_11 = arith.constant dense<0.000000e+00> : vector<32x128xf32>
    %20 = tpu.matmul %7, %19, %cst_11 {dimension_numbers = #tpu.dot_dimension_numbers<[1], [0], [0], [1], [0, 0, 1, 1], [], []>} : vector<32x128xf32>, vector<128x128xf32>, vector<32x128xf32> -> vector<32x128xf32>
    %c31_i32 = arith.constant 31 : i32
    %21 = tpu.dynamic_rotate %20 by %c31_i32 dim 0 : vector<32x128xf32>, i32 -> vector<32x128xf32>
    %22 = arith.addf %17, %21 : vector<32x128xf32>
    %c0_12 = arith.constant 0 : index
    %c0_13 = arith.constant 0 : index
    %23 = vector.load %arg4[%c0_12, %c0_13] : memref<1x128xf32, #tpu.memory_space<vmem>>, vector<1x128xf32>
    %24 = vector.broadcast %23 : vector<1x128xf32> to vector<32x128xf32>
    %25 = arith.addf %22, %24 : vector<32x128xf32>
    %26 = vector.broadcast %2 : vector<32x1xf32> to vector<32x128xf32>
    %27 = arith.mulf %25, %26 : vector<32x128xf32>
    %cst_14 = arith.constant 0.000000e+00 : f32
    %28 = vector.broadcast %cst_14 : f32 to vector<32x128xf32>
    %c0_15 = arith.constant 0 : index
    %c0_16 = arith.constant 0 : index
    %c0_17 = arith.constant 0 : index
    %29 = vector.load %arg5[%c0_15, %c0_16, %c0_17] : memref<3x128x128xf32, #tpu.memory_space<vmem>>, vector<1x128x128xf32>
    %30 = vector.shape_cast %29 : vector<1x128x128xf32> to vector<128x128xf32>
    %cst_18 = arith.constant dense<0.000000e+00> : vector<32x128xf32>
    %31 = tpu.matmul %27, %30, %cst_18 {dimension_numbers = #tpu.dot_dimension_numbers<[1], [0], [0], [1], [0, 0, 1, 1], [], []>} : vector<32x128xf32>, vector<128x128xf32>, vector<32x128xf32> -> vector<32x128xf32>
    %c1_i32_19 = arith.constant 1 : i32
    %32 = tpu.dynamic_rotate %31 by %c1_i32_19 dim 0 : vector<32x128xf32>, i32 -> vector<32x128xf32>
    %33 = arith.addf %28, %32 : vector<32x128xf32>
    %c1_20 = arith.constant 1 : index
    %c0_21 = arith.constant 0 : index
    %c0_22 = arith.constant 0 : index
    %34 = vector.load %arg5[%c1_20, %c0_21, %c0_22] : memref<3x128x128xf32, #tpu.memory_space<vmem>>, vector<1x128x128xf32>
    %35 = vector.shape_cast %34 : vector<1x128x128xf32> to vector<128x128xf32>
    %cst_23 = arith.constant dense<0.000000e+00> : vector<32x128xf32>
    %36 = tpu.matmul %27, %35, %cst_23 {dimension_numbers = #tpu.dot_dimension_numbers<[1], [0], [0], [1], [0, 0, 1, 1], [], []>} : vector<32x128xf32>, vector<128x128xf32>, vector<32x128xf32> -> vector<32x128xf32>
    %37 = arith.addf %33, %36 : vector<32x128xf32>
    %c2_24 = arith.constant 2 : index
    %c0_25 = arith.constant 0 : index
    %c0_26 = arith.constant 0 : index
    %38 = vector.load %arg5[%c2_24, %c0_25, %c0_26] : memref<3x128x128xf32, #tpu.memory_space<vmem>>, vector<1x128x128xf32>
    %39 = vector.shape_cast %38 : vector<1x128x128xf32> to vector<128x128xf32>
    %cst_27 = arith.constant dense<0.000000e+00> : vector<32x128xf32>
    %40 = tpu.matmul %27, %39, %cst_27 {dimension_numbers = #tpu.dot_dimension_numbers<[1], [0], [0], [1], [0, 0, 1, 1], [], []>} : vector<32x128xf32>, vector<128x128xf32>, vector<32x128xf32> -> vector<32x128xf32>
    %c31_i32_28 = arith.constant 31 : i32
    %41 = tpu.dynamic_rotate %40 by %c31_i32_28 dim 0 : vector<32x128xf32>, i32 -> vector<32x128xf32>
    %42 = arith.addf %37, %41 : vector<32x128xf32>
    %c0_29 = arith.constant 0 : index
    %c0_30 = arith.constant 0 : index
    %43 = vector.load %arg6[%c0_29, %c0_30] : memref<1x128xf32, #tpu.memory_space<vmem>>, vector<1x128xf32>
    %44 = vector.broadcast %43 : vector<1x128xf32> to vector<32x128xf32>
    %45 = arith.addf %42, %44 : vector<32x128xf32>
    %46 = vector.broadcast %2 : vector<32x1xf32> to vector<32x128xf32>
    %47 = arith.mulf %45, %46 : vector<32x128xf32>
    %cst_31 = arith.constant 0.000000e+00 : f32
    %48 = vector.broadcast %cst_31 : f32 to vector<32x128xf32>
    %c0_32 = arith.constant 0 : index
    %c0_33 = arith.constant 0 : index
    %c0_34 = arith.constant 0 : index
    %49 = vector.load %arg7[%c0_32, %c0_33, %c0_34] : memref<3x128x128xf32, #tpu.memory_space<vmem>>, vector<1x128x128xf32>
    %50 = vector.shape_cast %49 : vector<1x128x128xf32> to vector<128x128xf32>
    %cst_35 = arith.constant dense<0.000000e+00> : vector<32x128xf32>
    %51 = tpu.matmul %47, %50, %cst_35 {dimension_numbers = #tpu.dot_dimension_numbers<[1], [0], [0], [1], [0, 0, 1, 1], [], []>} : vector<32x128xf32>, vector<128x128xf32>, vector<32x128xf32> -> vector<32x128xf32>
    %c1_i32_36 = arith.constant 1 : i32
    %52 = tpu.dynamic_rotate %51 by %c1_i32_36 dim 0 : vector<32x128xf32>, i32 -> vector<32x128xf32>
    %53 = arith.addf %48, %52 : vector<32x128xf32>
    %c1_37 = arith.constant 1 : index
    %c0_38 = arith.constant 0 : index
    %c0_39 = arith.constant 0 : index
    %54 = vector.load %arg7[%c1_37, %c0_38, %c0_39] : memref<3x128x128xf32, #tpu.memory_space<vmem>>, vector<1x128x128xf32>
    %55 = vector.shape_cast %54 : vector<1x128x128xf32> to vector<128x128xf32>
    %cst_40 = arith.constant dense<0.000000e+00> : vector<32x128xf32>
    %56 = tpu.matmul %47, %55, %cst_40 {dimension_numbers = #tpu.dot_dimension_numbers<[1], [0], [0], [1], [0, 0, 1, 1], [], []>} : vector<32x128xf32>, vector<128x128xf32>, vector<32x128xf32> -> vector<32x128xf32>
    %57 = arith.addf %53, %56 : vector<32x128xf32>
    %c2_41 = arith.constant 2 : index
    %c0_42 = arith.constant 0 : index
    %c0_43 = arith.constant 0 : index
    %58 = vector.load %arg7[%c2_41, %c0_42, %c0_43] : memref<3x128x128xf32, #tpu.memory_space<vmem>>, vector<1x128x128xf32>
    %59 = vector.shape_cast %58 : vector<1x128x128xf32> to vector<128x128xf32>
    %cst_44 = arith.constant dense<0.000000e+00> : vector<32x128xf32>
    %60 = tpu.matmul %47, %59, %cst_44 {dimension_numbers = #tpu.dot_dimension_numbers<[1], [0], [0], [1], [0, 0, 1, 1], [], []>} : vector<32x128xf32>, vector<128x128xf32>, vector<32x128xf32> -> vector<32x128xf32>
    %c31_i32_45 = arith.constant 31 : i32
    %61 = tpu.dynamic_rotate %60 by %c31_i32_45 dim 0 : vector<32x128xf32>, i32 -> vector<32x128xf32>
    %62 = arith.addf %57, %61 : vector<32x128xf32>
    %c0_46 = arith.constant 0 : index
    %c0_47 = arith.constant 0 : index
    %63 = vector.load %arg8[%c0_46, %c0_47] : memref<1x128xf32, #tpu.memory_space<vmem>>, vector<1x128xf32>
    %64 = vector.broadcast %63 : vector<1x128xf32> to vector<32x128xf32>
    %65 = arith.addf %62, %64 : vector<32x128xf32>
    %66 = vector.broadcast %2 : vector<32x1xf32> to vector<32x128xf32>
    %67 = arith.mulf %65, %66 : vector<32x128xf32>
    %c0_48 = arith.constant 0 : index
    %c0_49 = arith.constant 0 : index
    %68 = vector.load %arg9[%c0_48, %c0_49] : memref<128x3xf32, #tpu.memory_space<vmem>>, vector<128x3xf32>
    %cst_50 = arith.constant dense<0.000000e+00> : vector<32x3xf32>
    %69 = tpu.matmul %67, %68, %cst_50 {dimension_numbers = #tpu.dot_dimension_numbers<[1], [0], [0], [1], [0, 0, 1, 1], [], []>} : vector<32x128xf32>, vector<128x3xf32>, vector<32x3xf32> -> vector<32x3xf32>
    %cst_51 = arith.constant 0.000000e+00 : f32
    %70 = vector.broadcast %cst_51 : f32 to vector<32x1xf32>
    %71 = vector.extract_strided_slice %69 {offsets = [0, 0], sizes = [32, 1], strides = [1, 1]} : vector<32x3xf32> to vector<32x1xf32>
    %c1_i32_52 = arith.constant 1 : i32
    %72 = tpu.dynamic_rotate %71 by %c1_i32_52 dim 0 : vector<32x1xf32>, i32 -> vector<32x1xf32>
    %73 = arith.addf %70, %72 : vector<32x1xf32>
    %74 = vector.extract_strided_slice %69 {offsets = [0, 1], sizes = [32, 1], strides = [1, 1]} : vector<32x3xf32> to vector<32x1xf32>
    %75 = arith.addf %73, %74 : vector<32x1xf32>
    %76 = vector.extract_strided_slice %69 {offsets = [0, 2], sizes = [32, 1], strides = [1, 1]} : vector<32x3xf32> to vector<32x1xf32>
    %c31_i32_53 = arith.constant 31 : i32
    %77 = tpu.dynamic_rotate %76 by %c31_i32_53 dim 0 : vector<32x1xf32>, i32 -> vector<32x1xf32>
    %78 = arith.addf %75, %77 : vector<32x1xf32>
    %c2_i32 = arith.constant 2 : i32
    %79 = tpu.dynamic_rotate %2 by %c2_i32 dim 0 : vector<32x1xf32>, i32 -> vector<32x1xf32>
    %c1_i32_54 = arith.constant 1 : i32
    %80 = tpu.dynamic_rotate %2 by %c1_i32_54 dim 0 : vector<32x1xf32>, i32 -> vector<32x1xf32>
    %c31_i32_55 = arith.constant 31 : i32
    %81 = tpu.dynamic_rotate %2 by %c31_i32_55 dim 0 : vector<32x1xf32>, i32 -> vector<32x1xf32>
    %c30_i32 = arith.constant 30 : i32
    %82 = tpu.dynamic_rotate %2 by %c30_i32 dim 0 : vector<32x1xf32>, i32 -> vector<32x1xf32>
    %c2_i32_56 = arith.constant 2 : i32
    %83 = tpu.dynamic_rotate %5 by %c2_i32_56 dim 0 : vector<32x2xf32>, i32 -> vector<32x2xf32>
    %c1_i32_57 = arith.constant 1 : i32
    %84 = tpu.dynamic_rotate %5 by %c1_i32_57 dim 0 : vector<32x2xf32>, i32 -> vector<32x2xf32>
    %c31_i32_58 = arith.constant 31 : i32
    %85 = tpu.dynamic_rotate %5 by %c31_i32_58 dim 0 : vector<32x2xf32>, i32 -> vector<32x2xf32>
    %c30_i32_59 = arith.constant 30 : i32
    %86 = tpu.dynamic_rotate %5 by %c30_i32_59 dim 0 : vector<32x2xf32>, i32 -> vector<32x2xf32>
    %cst_60 = arith.constant 0.000000e+00 : f32
    %87 = vector.broadcast %cst_60 : f32 to vector<32x2xf32>
    %cst_61 = arith.constant 0.000000e+00 : f32
    %88 = vector.broadcast %cst_61 : f32 to vector<32x1xf32>
    %cst_62 = arith.constant 0.000000e+00 : f32
    %89 = vector.broadcast %cst_62 : f32 to vector<32x2xf32>
    %c0_63 = arith.constant 0 : index
    %c9 = arith.constant 9 : index
    %90 = vector.load %arg2[%c0_63, %c9] : memref<1x20xf32, #tpu.memory_space<vmem>>, vector<1x1xf32>
    %91 = vector.broadcast %90 : vector<1x1xf32> to vector<32x1xf32>
    %92 = arith.mulf %91, %79 : vector<32x1xf32>
    %93 = arith.addf %88, %92 : vector<32x1xf32>
    %c0_64 = arith.constant 0 : index
    %c0_65 = arith.constant 0 : index
    %94 = vector.load %arg2[%c0_64, %c0_65] : memref<1x20xf32, #tpu.memory_space<vmem>>, vector<1x1xf32>
    %95 = vector.broadcast %94 : vector<1x1xf32> to vector<32x2xf32>
    %96 = arith.mulf %95, %83 : vector<32x2xf32>
    %97 = arith.addf %89, %96 : vector<32x2xf32>
    %c0_66 = arith.constant 0 : index
    %c12 = arith.constant 12 : index
    %98 = vector.load %arg2[%c0_66, %c12] : memref<1x20xf32, #tpu.memory_space<vmem>>, vector<1x1xf32>
    %99 = vector.broadcast %98 : vector<1x1xf32> to vector<32x1xf32>
    %100 = arith.mulf %99, %80 : vector<32x1xf32>
    %101 = arith.addf %93, %100 : vector<32x1xf32>
    %c0_67 = arith.constant 0 : index
    %c3 = arith.constant 3 : index
    %102 = vector.load %arg2[%c0_67, %c3] : memref<1x20xf32, #tpu.memory_space<vmem>>, vector<1x1xf32>
    %103 = vector.broadcast %102 : vector<1x1xf32> to vector<32x2xf32>
    %104 = arith.mulf %103, %84 : vector<32x2xf32>
    %105 = arith.addf %97, %104 : vector<32x2xf32>
    %c0_68 = arith.constant 0 : index
    %c15 = arith.constant 15 : index
    %106 = vector.load %arg2[%c0_68, %c15] : memref<1x20xf32, #tpu.memory_space<vmem>>, vector<1x1xf32>
    %107 = vector.broadcast %106 : vector<1x1xf32> to vector<32x1xf32>
    %108 = arith.mulf %107, %2 : vector<32x1xf32>
    %109 = arith.addf %101, %108 : vector<32x1xf32>
    %c0_69 = arith.constant 0 : index
    %c6 = arith.constant 6 : index
    %110 = vector.load %arg2[%c0_69, %c6] : memref<1x20xf32, #tpu.memory_space<vmem>>, vector<1x1xf32>
    %111 = vector.broadcast %110 : vector<1x1xf32> to vector<32x2xf32>
    %112 = arith.mulf %111, %5 : vector<32x2xf32>
    %113 = arith.addf %105, %112 : vector<32x2xf32>
    %114 = arith.mulf %80, %109 : vector<32x1xf32>
    %115 = arith.addf %78, %114 : vector<32x1xf32>
    %116 = vector.broadcast %80 : vector<32x1xf32> to vector<32x2xf32>
    %117 = arith.mulf %116, %113 : vector<32x2xf32>
    %118 = arith.addf %87, %117 : vector<32x2xf32>
    %cst_70 = arith.constant 0.000000e+00 : f32
    %119 = vector.broadcast %cst_70 : f32 to vector<32x1xf32>
    %cst_71 = arith.constant 0.000000e+00 : f32
    %120 = vector.broadcast %cst_71 : f32 to vector<32x2xf32>
    %c0_72 = arith.constant 0 : index
    %c10 = arith.constant 10 : index
    %121 = vector.load %arg2[%c0_72, %c10] : memref<1x20xf32, #tpu.memory_space<vmem>>, vector<1x1xf32>
    %122 = vector.broadcast %121 : vector<1x1xf32> to vector<32x1xf32>
    %123 = arith.mulf %122, %80 : vector<32x1xf32>
    %124 = arith.addf %119, %123 : vector<32x1xf32>
    %c0_73 = arith.constant 0 : index
    %c1_74 = arith.constant 1 : index
    %125 = vector.load %arg2[%c0_73, %c1_74] : memref<1x20xf32, #tpu.memory_space<vmem>>, vector<1x1xf32>
    %126 = vector.broadcast %125 : vector<1x1xf32> to vector<32x2xf32>
    %127 = arith.mulf %126, %84 : vector<32x2xf32>
    %128 = arith.addf %120, %127 : vector<32x2xf32>
    %c0_75 = arith.constant 0 : index
    %c13 = arith.constant 13 : index
    %129 = vector.load %arg2[%c0_75, %c13] : memref<1x20xf32, #tpu.memory_space<vmem>>, vector<1x1xf32>
    %130 = vector.broadcast %129 : vector<1x1xf32> to vector<32x1xf32>
    %131 = arith.mulf %130, %2 : vector<32x1xf32>
    %132 = arith.addf %124, %131 : vector<32x1xf32>
    %c0_76 = arith.constant 0 : index
    %c4 = arith.constant 4 : index
    %133 = vector.load %arg2[%c0_76, %c4] : memref<1x20xf32, #tpu.memory_space<vmem>>, vector<1x1xf32>
    %134 = vector.broadcast %133 : vector<1x1xf32> to vector<32x2xf32>
    %135 = arith.mulf %134, %5 : vector<32x2xf32>
    %136 = arith.addf %128, %135 : vector<32x2xf32>
    %c0_77 = arith.constant 0 : index
    %c16 = arith.constant 16 : index
    %137 = vector.load %arg2[%c0_77, %c16] : memref<1x20xf32, #tpu.memory_space<vmem>>, vector<1x1xf32>
    %138 = vector.broadcast %137 : vector<1x1xf32> to vector<32x1xf32>
    %139 = arith.mulf %138, %81 : vector<32x1xf32>
    %140 = arith.addf %132, %139 : vector<32x1xf32>
    %c0_78 = arith.constant 0 : index
    %c7 = arith.constant 7 : index
    %141 = vector.load %arg2[%c0_78, %c7] : memref<1x20xf32, #tpu.memory_space<vmem>>, vector<1x1xf32>
    %142 = vector.broadcast %141 : vector<1x1xf32> to vector<32x2xf32>
    %143 = arith.mulf %142, %85 : vector<32x2xf32>
    %144 = arith.addf %136, %143 : vector<32x2xf32>
    %145 = arith.mulf %2, %140 : vector<32x1xf32>
    %146 = arith.addf %115, %145 : vector<32x1xf32>
    %147 = vector.broadcast %2 : vector<32x1xf32> to vector<32x2xf32>
    %148 = arith.mulf %147, %144 : vector<32x2xf32>
    %149 = arith.addf %118, %148 : vector<32x2xf32>
    %cst_79 = arith.constant 0.000000e+00 : f32
    %150 = vector.broadcast %cst_79 : f32 to vector<32x1xf32>
    %cst_80 = arith.constant 0.000000e+00 : f32
    %151 = vector.broadcast %cst_80 : f32 to vector<32x2xf32>
    %c0_81 = arith.constant 0 : index
    %c11 = arith.constant 11 : index
    %152 = vector.load %arg2[%c0_81, %c11] : memref<1x20xf32, #tpu.memory_space<vmem>>, vector<1x1xf32>
    %153 = vector.broadcast %152 : vector<1x1xf32> to vector<32x1xf32>
    %154 = arith.mulf %153, %2 : vector<32x1xf32>
    %155 = arith.addf %150, %154 : vector<32x1xf32>
    %c0_82 = arith.constant 0 : index
    %c2_83 = arith.constant 2 : index
    %156 = vector.load %arg2[%c0_82, %c2_83] : memref<1x20xf32, #tpu.memory_space<vmem>>, vector<1x1xf32>
    %157 = vector.broadcast %156 : vector<1x1xf32> to vector<32x2xf32>
    %158 = arith.mulf %157, %5 : vector<32x2xf32>
    %159 = arith.addf %151, %158 : vector<32x2xf32>
    %c0_84 = arith.constant 0 : index
    %c14 = arith.constant 14 : index
    %160 = vector.load %arg2[%c0_84, %c14] : memref<1x20xf32, #tpu.memory_space<vmem>>, vector<1x1xf32>
    %161 = vector.broadcast %160 : vector<1x1xf32> to vector<32x1xf32>
    %162 = arith.mulf %161, %81 : vector<32x1xf32>
    %163 = arith.addf %155, %162 : vector<32x1xf32>
    %c0_85 = arith.constant 0 : index
    %c5 = arith.constant 5 : index
    %164 = vector.load %arg2[%c0_85, %c5] : memref<1x20xf32, #tpu.memory_space<vmem>>, vector<1x1xf32>
    %165 = vector.broadcast %164 : vector<1x1xf32> to vector<32x2xf32>
    %166 = arith.mulf %165, %85 : vector<32x2xf32>
    %167 = arith.addf %159, %166 : vector<32x2xf32>
    %c0_86 = arith.constant 0 : index
    %c17 = arith.constant 17 : index
    %168 = vector.load %arg2[%c0_86, %c17] : memref<1x20xf32, #tpu.memory_space<vmem>>, vector<1x1xf32>
    %169 = vector.broadcast %168 : vector<1x1xf32> to vector<32x1xf32>
    %170 = arith.mulf %169, %82 : vector<32x1xf32>
    %171 = arith.addf %163, %170 : vector<32x1xf32>
    %c0_87 = arith.constant 0 : index
    %c8 = arith.constant 8 : index
    %172 = vector.load %arg2[%c0_87, %c8] : memref<1x20xf32, #tpu.memory_space<vmem>>, vector<1x1xf32>
    %173 = vector.broadcast %172 : vector<1x1xf32> to vector<32x2xf32>
    %174 = arith.mulf %173, %86 : vector<32x2xf32>
    %175 = arith.addf %167, %174 : vector<32x2xf32>
    %176 = arith.mulf %81, %171 : vector<32x1xf32>
    %177 = arith.addf %146, %176 : vector<32x1xf32>
    %178 = vector.broadcast %81 : vector<32x1xf32> to vector<32x2xf32>
    %179 = arith.mulf %178, %175 : vector<32x2xf32>
    %180 = arith.addf %149, %179 : vector<32x2xf32>
    %c0_88 = arith.constant 0 : index
    %c18 = arith.constant 18 : index
    %181 = vector.load %arg2[%c0_88, %c18] : memref<1x20xf32, #tpu.memory_space<vmem>>, vector<1x1xf32>
    %182 = vector.broadcast %181 : vector<1x1xf32> to vector<32x1xf32>
    %183 = arith.addf %177, %182 : vector<32x1xf32>
    %184 = vector.broadcast %183 : vector<32x1xf32> to vector<32x2xf32>
    %185 = arith.addf %184, %180 : vector<32x2xf32>
    %186 = vector.broadcast %2 : vector<32x1xf32> to vector<32x2xf32>
    %187 = arith.mulf %186, %185 : vector<32x2xf32>
    %c0_89 = arith.constant 0 : index
    %c19 = arith.constant 19 : index
    %188 = vector.load %arg2[%c0_89, %c19] : memref<1x20xf32, #tpu.memory_space<vmem>>, vector<1x1xf32>
    %189 = vector.broadcast %188 : vector<1x1xf32> to vector<32x2xf32>
    %190 = arith.addf %187, %189 : vector<32x2xf32>
    %191 = arith.negf %190 : vector<32x2xf32>
    %192 = math.exp %191 : vector<32x2xf32>
    %cst_90 = arith.constant 1.000000e+00 : f32
    %193 = vector.broadcast %cst_90 : f32 to vector<32x2xf32>
    %194 = arith.addf %193, %192 : vector<32x2xf32>
    %195 = arith.divf %193, %194 : vector<32x2xf32>
    %196 = vector.extract_strided_slice %195 {offsets = [8, 0], sizes = [16, 2], strides = [1, 1]} : vector<32x2xf32> to vector<16x2xf32>
    %c0_91 = arith.constant 0 : index
    %c0_92 = arith.constant 0 : index
    %c0_93 = arith.constant 0 : index
    %197 = vector.load %arg10[%c0_91, %c0_92, %c0_93] : memref<1x16x2xf32, #tpu.memory_space<vmem>>, vector<1x16x2xf32>
    %198 = vector.shape_cast %197 : vector<1x16x2xf32> to vector<16x2xf32>
    %199 = vector.shape_cast %196 : vector<16x2xf32> to vector<1x16x2xf32>
    tpu.vector_store %arg10[%c0_91, %c0_92, %c0_93], %199 {strides = array<i32>} : memref<1x16x2xf32, #tpu.memory_space<vmem>>, vector<1x16x2xf32>,
    return
  }
  func.func @transform_0(%arg0: i32) -> (i32, i32, i32) {
    %c0_i32 = arith.constant 0 : i32
    %c0_i32_0 = arith.constant 0 : i32
    %c0_i32_1 = arith.constant 0 : i32
    return %arg0, %c0_i32, %c0_i32_0 : i32, i32, i32
  }
  func.func @transform_1(%arg0: i32) -> (i32, i32) {
    %c0_i32 = arith.constant 0 : i32
    %c0_i32_0 = arith.constant 0 : i32
    %c0_i32_1 = arith.constant 0 : i32
    return %c0_i32, %c0_i32_0 : i32, i32
  }
  func.func @transform_2(%arg0: i32) -> (i32, i32, i32) {
    %c0_i32 = arith.constant 0 : i32
    %c0_i32_0 = arith.constant 0 : i32
    %c0_i32_1 = arith.constant 0 : i32
    %c0_i32_2 = arith.constant 0 : i32
    return %c0_i32, %c0_i32_0, %c0_i32_1 : i32, i32, i32
  }
  func.func @transform_3(%arg0: i32) -> (i32, i32) {
    %c0_i32 = arith.constant 0 : i32
    %c0_i32_0 = arith.constant 0 : i32
    %c0_i32_1 = arith.constant 0 : i32
    return %c0_i32, %c0_i32_0 : i32, i32
  }
  func.func @transform_4(%arg0: i32) -> (i32, i32, i32) {
    %c0_i32 = arith.constant 0 : i32
    %c0_i32_0 = arith.constant 0 : i32
    %c0_i32_1 = arith.constant 0 : i32
    %c0_i32_2 = arith.constant 0 : i32
    return %c0_i32, %c0_i32_0, %c0_i32_1 : i32, i32, i32
  }
  func.func @transform_5(%arg0: i32) -> (i32, i32) {
    %c0_i32 = arith.constant 0 : i32
    %c0_i32_0 = arith.constant 0 : i32
    %c0_i32_1 = arith.constant 0 : i32
    return %c0_i32, %c0_i32_0 : i32, i32
  }
  func.func @transform_6(%arg0: i32) -> (i32, i32, i32) {
    %c0_i32 = arith.constant 0 : i32
    %c0_i32_0 = arith.constant 0 : i32
    %c0_i32_1 = arith.constant 0 : i32
    %c0_i32_2 = arith.constant 0 : i32
    return %c0_i32, %c0_i32_0, %c0_i32_1 : i32, i32, i32
  }
  func.func @transform_7(%arg0: i32) -> (i32, i32) {
    %c0_i32 = arith.constant 0 : i32
    %c0_i32_0 = arith.constant 0 : i32
    %c0_i32_1 = arith.constant 0 : i32
    return %c0_i32, %c0_i32_0 : i32, i32
  }
  func.func @transform_8(%arg0: i32) -> (i32, i32) {
    %c0_i32 = arith.constant 0 : i32
    %c0_i32_0 = arith.constant 0 : i32
    %c0_i32_1 = arith.constant 0 : i32
    return %c0_i32, %c0_i32_0 : i32, i32
  }
  func.func @transform_9(%arg0: i32) -> (i32, i32, i32) {
    %c0_i32 = arith.constant 0 : i32
    %c0_i32_0 = arith.constant 0 : i32
    %c0_i32_1 = arith.constant 0 : i32
    return %arg0, %c0_i32, %c0_i32_0 : i32, i32, i32
  }
}

</mosaic_0001>

<bundles_post_ra>
// kernel: tpu_custom_call.1
= control target key start
LH: loop header
LB: loop body
LE: loop exit
PB: predicated region body
PF: predicated region fallthrough
CT: control target
= control target key end

     0   :  { %14 = vsyncpa [#allocation3], 0  ;;  %s3876_s0 = inlined_call_operand.vmem [shape: f32[2,32,128], index: 0, kind: input, shape index: {}]   ;;  %s3877_s1 = inlined_call_operand.vmem [shape: f32[1,20], index: 1, kind: input, shape index: {}]   ;;  %s3878_s2 = inlined_call_operand.hbm [shape: f32[3,128,128], index: 2, kind: input, shape index: {}]   ;;  %s3879_s3 = inlined_call_operand.vmem [shape: f32[1,128], index: 3, kind: input, shape index: {}]   ;;  %s3880_s4 = inlined_call_operand.hbm [shape: f32[3,128,128], index: 4, kind: input, shape index: {}]   ;;  %s3881_s5 = inlined_call_operand.vmem [shape: f32[1,128], index: 5, kind: input, shape index: {}]   ;;  %s3882_s6 = inlined_call_operand.hbm [shape: f32[3,128,128], index: 6, kind: input, shape index: {}]   ;;  %s3883_s7 = inlined_call_operand.vmem [shape: f32[1,128], index: 7, kind: input, shape index: {}]   ;;  %s3884_s8 = inlined_call_operand.vmem [shape: f32[128,3], index: 8, kind: input, shape index: {}]   ;;  %s3885_s9 = inlined_call_operand.vmem [shape: f32[2,16,2], index: 9, kind: output, shape index: {}]  }
   0x1   :  { %15 = vsyncpa [#allocation5], 0  ;;  %s3325_s30 = smov 0  }
   0x2 LB: > { %s3331_s10 = sadd.s32 4294967295, %s3240_s30   ;;  %p2123_p0 = scmp.ge.s32.totalorder %s3240_s30, 1  ;;  %s3240_s30 = sphi %s3325_s30, %s21_s30  }
   0x3   : > { %p246_p1 = scmp.lt.s32.totalorder %s3240_s30, 3  ;;  %p3886_p2 = scmp.eq.s32.totalorder %s3331_s10, 0 }
   0x4   : > { %s3242_s12 = smov [#allocation4]   ;;  %s3243_s14 = smov [#allocation2]  }
   0x5   : > { %p3336_p3 = pnand %p2123_p0, %p246_p1  ;;  %s277_s13 = sshll.u32 %s3242_s12, 4  ;;  %s278_s13 = int_to_ptr.vmem [resolvable:$true] %s277_s13 }
   0x6   : > { %s261_s15 = sshll.u32 %s3243_s14, 4  ;;  %s3244_s17 = smov [#allocation6]   ;;  %s3348_s15 = int_to_ptr.vmem [resolvable:$true] %s261_s15 }
   0x7   : > { %s3888_s11 = scalar_select %p3336_p3, 1, 0 }
   0x8   : > { %p3058_p4 = pneg %p3336_p3  ;;  %s293_s18 = sshll.u32 %s3244_s17, 4  ;;  %s3350_s18 = int_to_ptr.vmem [resolvable:$true] %s293_s18 }
   0x9   : > { %s3142_s21 = scalar_lea.hbm %s3880_s4, 6144 }
   0xa   : > { %p3344_p5 = pnand %p3886_p2, %p3058_p4  ;;  %p3143_p6 = scmp.ne.s32.totalorder %s3880_s4, %s3142_s21 }
   0xb   : > { %p3149_p10 = scmp.lt.u32.totalorder %s3142_s21, %s3880_s4 }
   0xc   : > { %p3360_p7 = pneg %p3344_p5 }
   0xe   : > { %p3145_p8 = pnand %p3360_p7, %p3143_p6 }
  0x10   : > { %p3146_p9 = pneg %p3145_p8 }
  0x12   : > { %p3151_p11 = pnand %p3149_p10, %p3146_p9 }
  0x14   : > { %3154 = shalt.err (!%p3151_p11)
}
  0x15   : > { %s3155_s27 = scalar_lea.vmem %s278_s13, 6144  ;;  %p3163_p1 = scmp.lt.s32.totalorder %s278_s13, %s278_s13 }
  0x16   : > { %p3156_p12 = scmp.ne.s32.totalorder %s278_s13, %s3155_s27  ;;  %p3164_p4 = scmp.lt.s32.totalorder %s3155_s27, %s3155_s27 }
  0x18   : > { %p3158_p13 = pnand %p3156_p12, %p3360_p7  ;;  %p3165_p2 = por %p3164_p4, %p3163_p1 }
  0x1a   : > { %p3159_p0 = pneg %p3158_p13 }
  0x1c   : > { %p3166_p3 = pnand %p3165_p2, %p3159_p0 }
  0x1e   : > { %3169 = shalt.err (!%p3166_p3)
}
  0x1f   : > { %s3245_s28 = smov 128   ;;  %s3246_s29 = smov 8  }
  0x20   : > { %3064 = dma.hbm_to_vmem [thread:$0]  (!%p3344_p5), %s3880_s4, 6144, %s278_s13, [#allocation5], %s3245_s28, %s3245_s28, %s3246_s29  }
  0x21   : > { %s3170_s20 = scalar_lea.hbm %s3878_s2, 6144 }
  0x22   : > { %p3171_p2 = scmp.ne.s32.totalorder %s3878_s2, %s3170_s20  ;;  %p3177_p8 = scmp.lt.u32.totalorder %s3170_s20, %s3878_s2 }
  0x24   : > { %p3173_p3 = pnand %p3171_p2, %p3360_p7 }
  0x26   : > { %p3174_p6 = pneg %p3173_p3 }
  0x28   : > { %p3179_p9 = pnand %p3177_p8, %p3174_p6 }
  0x2a   : > { %3182 = shalt.err (!%p3179_p9)
}
  0x2b   : > { %s3183_s13 = scalar_lea.vmem %s3348_s15, 6144  ;;  %p3191_p13 = scmp.lt.s32.totalorder %s3348_s15, %s3348_s15 }
  0x2c   : > { %p3184_p10 = scmp.ne.s32.totalorder %s3348_s15, %s3183_s13  ;;  %p3192_p0 = scmp.lt.s32.totalorder %s3183_s13, %s3183_s13 }
  0x2e   : > { %p3186_p11 = pnand %p3184_p10, %p3360_p7  ;;  %p3193_p1 = por %p3192_p0, %p3191_p13 }
  0x30   : > { %p3187_p12 = pneg %p3186_p11 }
  0x32   : > { %p3194_p4 = pnand %p3193_p1, %p3187_p12 }
  0x34   : > { %3197 = shalt.err (!%p3194_p4)
}
  0x35   : > { %3061 = dma.hbm_to_vmem [thread:$0]  (!%p3344_p5), %s3878_s2, 6144, %s3348_s15, [#allocation3], %s3245_s28, %s3245_s28, %s3246_s29  }
  0x36   : > { %s3198_s17 = scalar_lea.hbm %s3882_s6, 6144 }
  0x37   : > { %p3199_p2 = scmp.ne.s32.totalorder %s3882_s6, %s3198_s17  ;;  %p3205_p8 = scmp.lt.u32.totalorder %s3198_s17, %s3882_s6 }
  0x39   : > { %p3201_p3 = pnand %p3199_p2, %p3360_p7 }
  0x3b   : > { %p3202_p6 = pneg %p3201_p3 }
  0x3d   : > { %p3207_p9 = pnand %p3205_p8, %p3202_p6 }
  0x3f   : > { %3210 = shalt.err (!%p3207_p9)
}
  0x40   : > { %s3211_s15 = scalar_lea.vmem %s3350_s18, 6144  ;;  %p3219_p13 = scmp.lt.s32.totalorder %s3350_s18, %s3350_s18 }
  0x41   : > { %p3212_p10 = scmp.ne.s32.totalorder %s3350_s18, %s3211_s15  ;;  %p3220_p0 = scmp.lt.s32.totalorder %s3211_s15, %s3211_s15 }
  0x43   : > { %p3214_p11 = pnand %p3212_p10, %p3360_p7  ;;  %p3221_p1 = por %p3220_p0, %p3219_p13 }
  0x45   : > { %p3215_p12 = pneg %p3214_p11 }
  0x47   : > { %p3222_p4 = pnand %p3221_p1, %p3215_p12 }
  0x49   : > { %3225 = shalt.err (!%p3222_p4)
}
  0x4a   : > { %3067 = dma.hbm_to_vmem [thread:$0]  (!%p3344_p5), %s3882_s6, 6144, %s3350_s18, [#allocation5], %s3245_s28, %s3245_s28, %s3246_s29  }
  0x4b   : > { %p3891_p2 = scmp.ne.s32.totalorder %s3888_s11, 0 }
  0x4c   : > { %p3892_p7 = scmp.eq.s32.totalorder (!%p3891_p2), %s3331_s10, 0 }
  0x4d   : > { %323 = sbr.rel (%p3891_p2) target bundleno = 1533 (0x5fd), region = 56 }
  0x54   : > { %3231 = dma.done.wait (%p3892_p7), [#allocation3], 6144   ;;  %p3893_p3 = pmov %p3892_p7 }
  0x56   : > { %3233 = vsyncadd (%p3893_p3), [#allocation3], 4294961152  ;;  %p3894_p6 = pmov %p3893_p3 }
  0x57   : > { %p3895_p8 = pmov %p3893_p3 }
  0x58   : > { %3235 = dma.done.wait (%p3894_p6), [#allocation5], 12288  }
  0x59   : > { %3237 = vsyncadd (%p3895_p8), [#allocation5], 4294955008  ;;  %p367_p9 = scmp.lt.s32.totalorder %s3331_s10, 1  ;;  %v3247_v0 = vmov 4   ;;  %v405_v5 = vld [vmem:[#allocation2] sm:$0xff]  ;;  %v406_v6 = vld [vmem:[#allocation2 + $0x8] sm:$0xff]  ;;  %v510_v58 = vlaneseq }
  0x5a   : > { %3116 = vset.pattern.permute.xlu1 %v3247_v0  ;;  %3115 = vset.pattern.permute.xlu0 %v3247_v0  ;;  %v2726_v7 = vpack.c.bf16 %v406_v6, %v405_v5  ;;  %v522_v8 = vld [vmem:[#allocation2 + $0x80] sm:$0xff]  ;;  %v523_v9 = vld [vmem:[#allocation2 + $0x88] sm:$0xff]  ;;  %v407_v10 = vld [vmem:[#allocation2 + $0x10] sm:$0xff]  ;;  %s3248_s28 = smov 124   ;;  %s3249_s29 = smov 9   ;;  %vm2032_vm4 = vcmask 15360  }
  0x5b   : > { %s3897_s10 = smov (!%p367_p9, %s3331_s10), 1  ;;  %v2758_v11 = vpack.c.bf16 %v523_v9, %v522_v8  ;;  %v408_v12 = vld [vmem:[#allocation2 + $0x18] sm:$0xff]  ;;  %v524_v13 = vld [vmem:[#allocation2 + $0x90] sm:$0xff]  ;;  %v409_v17 = vld [vmem:[#allocation2 + $0x20] sm:$0xff]  ;;  %v3499_v6 = vshrl.u32 %v510_v58, 7  ;;  %s3250_s13 = smov 16  }
  0x5c   : > { %s2144_s11 = sshll.u32 %s3897_s10, 5  ;;  %v525_v14 = vld [vmem:[#allocation2 + $0x98] sm:$0xff]  ;;  %2727 = vmatprep.subr.bf16.mxu0 %v2726_v7  ;;  %v2730_v15 = vpack.c.bf16 %v408_v12, %v407_v10  ;;  %v410_v18 = vld [vmem:[#allocation2 + $0x28] sm:$0xff]  ;;  %v526_v19 = vld [vmem:[#allocation2 + $0xa0] sm:$0xff]  ;;  %s3251_s12 = smov 11  }
  0x5d   : > { %s3451_s24 = scalar_lea.vmem %s3876_s0, %s2144_s11  ;;  %v2762_v16 = vpack.c.bf16 %v525_v14, %v524_v13  ;;  %v527_v20 = vld [vmem:[#allocation2 + $0xa8] sm:$0xff]  ;;  %2729 = vmatpush3.bf16.msra.mxu0 %v2726_v7  ;;  %2759 = vmatprep.subr.bf16.mxu1 %v2758_v11  ;;  %v2734_v21 = vpack.c.bf16 %v410_v18, %v409_v17  ;;  %v411_v23 = vld [vmem:[#allocation2 + $0x30] sm:$0xff]  ;;  %v412_v24 = vld [vmem:[#allocation2 + $0x38] sm:$0xff]  ;;  %vm733_vm0 = vcmp.lt.s32.totalorder %v3499_v6, 7  ;;  %vm1619_vm1 = vcmp.lt.s32.totalorder %v3499_v6, 6  ;;  %s3252_s14 = smov 125  }
  0x5e   : > { %v3454_v1 = vld [vmem:[%s3451_s24 + $0x10] sm:$0xff]  ;;  %v3457_v2 = vld [vmem:[%s3451_s24] sm:$0xff]  ;;  %v3460_v3 = vld [vmem:[%s3451_s24 + $0x18] sm:$0xff]  ;;  %2761 = vmatpush3.bf16.msra.mxu1 %v2758_v11  ;;  %2731 = vmatprep.subr.bf16.mxu0 %v2730_v15  ;;  %v2766_v22 = vpack.c.bf16 %v527_v20, %v526_v19  ;;  %v2738_v27 = vpack.c.bf16 %v412_v24, %v411_v23  ;;  %vm1600_vm2 = vcmp.lt.s32.totalorder %v3499_v6, 2  ;;  %vm512_vm3 = vcmp.lt.s32.totalorder %v3499_v6, 1  ;;  %s3253_s17 = smov 12  }
  0x5f   : > { %393 = vperm.xlu1 %3116, %v3454_v1   ;;  %383 = vperm.xlu0 %3115, %v3457_v2   ;;  %v3465_v4 = vld [vmem:[%s3451_s24 + $0x8] sm:$0xff]  ;;  %v528_v25 = vld [vmem:[#allocation2 + $0xb0] sm:$0xff]  ;;  %v529_v26 = vld [vmem:[#allocation2 + $0xb8] sm:$0xff]  ;;  %s3254_s19 = smov 10   ;;  %s3255_s20 = smov 14  }
  0x60   : > { %2763 = vmatprep.subr.bf16.mxu1 %v2762_v16  ;;  %v2770_v28 = vpack.c.bf16 %v529_v26, %v528_v25  ;;  %v413_v29 = vld [vmem:[#allocation2 + $0x40] sm:$0xff]  ;;  %v414_v30 = vld [vmem:[#allocation2 + $0x48] sm:$0xff]  ;;  %v415_v35 = vld [vmem:[#allocation2 + $0x50] sm:$0xff]  ;;  %s3257_s21 = smov 122   ;;  %s3258_s22 = smov 17  }
  0x61   : > { %2733 = vmatpush3.bf16.msra.mxu0 %v2730_v15  ;;  %v530_v31 = vld [vmem:[#allocation2 + $0xc0] sm:$0xff]  ;;  %v531_v32 = vld [vmem:[#allocation2 + $0xc8] sm:$0xff]  ;;  %v2742_v33 = vpack.c.bf16 %v414_v30, %v413_v29  ;;  %v416_v36 = vld [vmem:[#allocation2 + $0x58] sm:$0xff]  ;;  %s3260_s15 = smov 7   ;;  %s3261_s23 = smov 123  }
  0x62   : > { %2765 = vmatpush3.bf16.msra.mxu1 %v2762_v16  ;;  %2735 = vmatprep.subr.bf16.mxu0 %v2734_v21  ;;  %v2774_v34 = vpack.c.bf16 %v531_v32, %v530_v31  ;;  %v532_v37 = vld [vmem:[#allocation2 + $0xd0] sm:$0xff]  ;;  %v533_v38 = vld [vmem:[#allocation2 + $0xd8] sm:$0xff]  ;;  %v2746_v39 = vpack.c.bf16 %v416_v36, %v415_v35  ;;  %v417_v41 = vld [vmem:[#allocation2 + $0x60] sm:$0xff]  ;;  %s3264_s16 = smov 119   ;;  %s3265_s18 = smov 117  }
  0x63   : > { %398 = vperm.xlu1 %3116, %v3460_v3   ;;  %388 = vperm.xlu0 %3115, %v3465_v4   ;;  %v2778_v40 = vpack.c.bf16 %v533_v38, %v532_v37  ;;  %v418_v42 = vld [vmem:[#allocation2 + $0x68] sm:$0xff]  ;;  %v534_v43 = vld [vmem:[#allocation2 + $0xe0] sm:$0xff]  ;;  %v419_v47 = vld [vmem:[#allocation2 + $0x70] sm:$0xff]  ;;  %s3271_s27 = smov 110  }
  0x64   : > { %2767 = vmatprep.subr.bf16.mxu1 %v2766_v22  ;;  %v535_v44 = vld [vmem:[#allocation2 + $0xe8] sm:$0xff]  ;;  %v2750_v45 = vpack.c.bf16 %v418_v42, %v417_v41  ;;  %v420_v48 = vld [vmem:[#allocation2 + $0x78] sm:$0xff]  ;;  %v536_v49 = vld [vmem:[#allocation2 + $0xf0] sm:$0xff] }
  0x65   : > { %2737 = vmatpush3.bf16.msra.mxu0 %v2734_v21  ;;  %v2782_v46 = vpack.c.bf16 %v535_v44, %v534_v43  ;;  %v537_v50 = vld [vmem:[#allocation2 + $0xf8] sm:$0xff]  ;;  %v2754_v51 = vpack.c.bf16 %v420_v48, %v419_v47  ;;  %v628_v53 = vld [vmem:[#allocation2 + $0x100] sm:$0xff]  ;;  %v629_v54 = vld [vmem:[#allocation2 + $0x108] sm:$0xff] }
  0x66   : > { %2769 = vmatpush3.bf16.msra.mxu1 %v2766_v22  ;;  %2739 = vmatprep.subr.bf16.mxu0 %v2738_v27  ;;  %v2786_v52 = vpack.c.bf16 %v537_v50, %v536_v49  ;;  %v2790_v55 = vpack.c.bf16 %v629_v54, %v628_v53  ;;  %v630_v60 = vld [vmem:[#allocation2 + $0x110] sm:$0xff]  ;;  %v631_v61 = vld [vmem:[#allocation2 + $0x118] sm:$0xff]  ;;  %v632_v8 = vld [vmem:[#allocation2 + $0x120] sm:$0xff] }
  0x67   : > { %1592 = vrot.lane.b32.xlu1 %v3454_v1, %s3248_s28  ;;  %1590 = vrot.lane.b32.xlu0 %v3465_v4, %s3248_s28  ;;  %v2794_v7 = vpack.c.bf16 %v631_v61, %v630_v60  ;;  %v633_v9 = vld [vmem:[#allocation2 + $0x128] sm:$0xff]  ;;  %v634_v19 = vld [vmem:[#allocation2 + $0x130] sm:$0xff]  ;;  %v635_v20 = vld [vmem:[#allocation2 + $0x138] sm:$0xff] }
  0x68   : > { %2771 = vmatprep.subr.bf16.mxu1 %v2770_v28  ;;  %v637_v29 = vld [vmem:[#allocation2 + $0x148] sm:$0xff]  ;;  %v3541_v30 = vld [vmem:[%s3877_s1] ss:$0 sm:$0xff]  ;;  %v643_v53 = vld [vmem:[#allocation2 + $0x178] sm:$0xff] }
  0x69   : > { %2741 = vmatpush3.bf16.msra.mxu0 %v2738_v27  ;;  %v2802_v27 = vpack.c.bf16 %v635_v20, %v634_v19  ;;  %v641_v47 = vld [vmem:[#allocation2 + $0x168] sm:$0xff]  ;;  %v757_v58 = vld [vmem:[#allocation4] sm:$0xff] }
  0x6a   : > { %2773 = vmatpush3.bf16.msra.mxu1 %v2770_v28  ;;  %2743 = vmatprep.subr.bf16.mxu0 %v2742_v33  ;;  %v636_v28 = vld [vmem:[#allocation2 + $0x140] sm:$0xff]  ;;  %v758_v60 = vld [vmem:[#allocation4 + $0x8] sm:$0xff] }
  0x6b   : > { %1608 = vrot.lane.b32.xlu0 %v3460_v3, %s3248_s28  ;;  %1588 = vrot.lane.b32.xlu1 %v3457_v2, %s3248_s28  ;;  %v2806_v35 = vpack.c.bf16 %v637_v29, %v636_v28  ;;  %v871_v61 = vld [vmem:[#allocation4 + $0x80] sm:$0xff]  ;;  %v876_v19 = vld [vmem:[#allocation4 + $0xa8] sm:$0xff]  ;;  %v878_v28 = vld [vmem:[#allocation4 + $0xb8] sm:$0xff] }
  0x6c   : > { %2775 = vmatprep.subr.bf16.mxu1 %v2774_v34 }
  0x6d   : > { %2745 = vmatpush3.bf16.msra.mxu0 %v2742_v33 }
  0x6e   : > { %2777 = vmatpush3.bf16.msra.mxu1 %v2774_v34  ;;  %2747 = vmatprep.subr.bf16.mxu0 %v2746_v39 }
  0x6f   : > { %1789 = vrot.lane.b32.xlu0 %v3465_v4, %s3249_s29  ;;  %1791 = vrot.lane.b32.xlu1 %v3454_v1, %s3249_s29 }
  0x70   : > { %2779 = vmatprep.subr.bf16.mxu1 %v2778_v40 }
  0x71   : > { %2749 = vmatpush3.bf16.msra.mxu0 %v2746_v39  ;;  %v638_v39 = vld [vmem:[#allocation2 + $0x150] sm:$0xff] }
  0x72   : > { %2781 = vmatpush3.bf16.msra.mxu1 %v2778_v40  ;;  %2751 = vmatprep.subr.bf16.mxu0 %v2750_v45  ;;  %v639_v40 = vld [vmem:[#allocation2 + $0x158] sm:$0xff] }
  0x73   : > { %2783 = vmatprep.subr.bf16.mxu1 %v2782_v46  ;;  %v2810_v44 = vpack.c.bf16 %v639_v40, %v638_v39  ;;  %v767_v40 = vld [vmem:[#allocation4 + $0x50] sm:$0xff] }
  0x75   : > { %2753 = vmatpush3.bf16.msra.mxu0 %v2750_v45 }
  0x76   : > { %2785 = vmatpush3.bf16.msra.mxu1 %v2782_v46  ;;  %2755 = vmatprep.subr.bf16.mxu0 %v2754_v51  ;;  %v640_v46 = vld [vmem:[#allocation2 + $0x160] sm:$0xff] }
  0x77   : > { %2787 = vmatprep.subr.bf16.mxu1 %v2786_v52  ;;  %v2814_v49 = vpack.c.bf16 %v641_v47, %v640_v46  ;;  %v769_v46 = vld [vmem:[#allocation4 + $0x60] sm:$0xff]  ;;  %v770_v47 = vld [vmem:[#allocation4 + $0x68] sm:$0xff] }
  0x79   : > { %2757 = vmatpush3.bf16.msra.mxu0 %v2754_v51 }
  0x7a   : > { %2789 = vmatpush3.bf16.msra.mxu1 %v2786_v52  ;;  %2791 = vmatprep.subr.bf16.mxu0 %v2790_v55  ;;  %v642_v52 = vld [vmem:[#allocation2 + $0x170] sm:$0xff] }
  0x7b   : > { %v2818_v54 = vpack.c.bf16 %v643_v53, %v642_v52  ;;  %v883_v52 = vld [vmem:[#allocation4 + $0xe0] sm:$0xff]  ;;  %v884_v53 = vld [vmem:[#allocation4 + $0xe8] sm:$0xff] }
  0xde   : > { %v3481_v56 = vpop.permute.xlu1 %393  ;;  %v3483_v57 = vpop.permute.xlu0 %383 }
  0xdf   : > { %v3487_v59 = vmul.f32 %v3483_v57, %v3457_v2  ;;  %v3493_v62 = vmul.f32 %v3481_v56, %v3454_v1 }
  0xe1   : > { %2378 = vmatprep.mubr.f32.mxu0 %v3487_v59  ;;  %2416 = vmatprep.mubr.f32.mxu1 %v3487_v59 }
  0xe2   : > { %v3495_v63 = vpop.permute.xlu1 %398  ;;  %v3497_v5 = vpop.permute.xlu0 %388 }
  0xe3   : > { %v3503_v2 = vmul.f32 %v3497_v5, %v3465_v4  ;;  %v3507_v10 = vmul.f32 %v3495_v63, %v3460_v3  ;;  %v2798_v3 = vpack.c.bf16 %v633_v9, %v632_v8  ;;  %v872_v8 = vld [vmem:[#allocation4 + $0x88] sm:$0xff]  ;;  %v759_v9 = vld [vmem:[#allocation4 + $0x10] sm:$0xff] }
  0xe5   : > { %2379 = vmatmul.mubr.f32.vlgmr.msra.gmra.mrb[0].mxu0 %v3503_v2  ;;  %2417 = vmatmul.mubr.f32.vlgmr.msra.gmra.mrb[0].mxu1 %v3503_v2 }
  0xe6   : > { %2793 = vmatpush3.bf16.msra.mxu0 %v2790_v55  ;;  %v3511_v11 = vpop.permute.xlu1 %1592  ;;  %v3513_v12 = vpop.permute.xlu0 %1590  ;;  %2381 = vmatprep.mubr.f32.mxu0 %v3493_v62  ;;  %v3256_v55 = vmov 5  }
  0xe7   : > { %v1612_v13 = vrot.slane %v3511_v11, 1  ;;  %v1617_v14 = vrot.slane %v3511_v11, 2  ;;  %2795 = vmatprep.subr.bf16.mxu0 %v2794_v7  ;;  %2419 = vmatprep.mubr.f32.mxu1 %v3493_v62  ;;  %v1599_v15 = vrot.slane %v3511_v11, 6  ;;  %v1598_v16 = vrot.slane %v3513_v12, 6 }
  0xe8   : > { %v1611_v17 = vrot.slane %v3513_v12, 1  ;;  %v1616_v18 = vrot.slane %v3513_v12, 2  ;;  %v1604_v38 = vrot.slane %v3513_v12, 7  ;;  %v1605_v43 = vrot.slane %v3511_v11, 7  ;;  %3117 = vset.pattern.permute.xlu0 %v3256_v55  ;;  %v760_v11 = vld [vmem:[#allocation4 + $0x18] sm:$0xff] }
  0xe9   : > { %2382 = vmatmul.mubr.f32.gmra.mrb[2].mxu0 %v3507_v10  ;;  %2420 = vmatmul.mubr.f32.gmra.mrb[2].mxu1 %v3507_v10  ;;  %v3545_v31 = vsel %vm1600_vm2, %v1598_v16, %v1599_v15  ;;  %v2854_v12 = vpack.c.bf16 %v872_v8, %v871_v61  ;;  %v761_v15 = vld [vmem:[#allocation4 + $0x20] sm:$0xff]  ;;  %v2878_v55 = vpack.c.bf16 %v884_v53, %v883_v52  ;;  %v772_v61 = vld [vmem:[#allocation4 + $0x78] sm:$0xff] }
  0xea   : > { %2797 = vmatpush3.bf16.msra.mxu0 %v2794_v7  ;;  %2454 = vmatprep.mubr.f32.mxu0 %v3487_v59  ;;  %v3531_v21 = vsel %vm733_vm0, %v1611_v17, %v1612_v13  ;;  %v1609_v22 = vpop.permute.xlu0 %1608  ;;  %v1589_v23 = vpop.permute.xlu1 %1588  ;;  %v3535_v24 = vsel %vm1619_vm1, %v1616_v18, %v1617_v14  ;;  %v3572_v50 = vsel %vm512_vm3, %v1604_v38, %v1605_v43  ;;  %v762_v17 = vld [vmem:[#allocation4 + $0x28] sm:$0xff]  ;;  %v875_v18 = vld [vmem:[#allocation4 + $0xa0] sm:$0xff]  ;;  %v881_v43 = vld [vmem:[#allocation4 + $0xd0] sm:$0xff] }
  0xeb   : > { %1825 = vrot.lane.b32.xlu0 %v3531_v21, %s3250_s13  ;;  %v1613_v25 = vrot.slane %v1609_v22, 1  ;;  %v1618_v26 = vrot.slane %v1609_v22, 2  ;;  %2799 = vmatprep.subr.bf16.mxu0 %v2798_v3  ;;  %v1603_v41 = vrot.slane %v1589_v23, 7  ;;  %v1597_v45 = vrot.slane %v1589_v23, 6  ;;  %v763_v23 = vld [vmem:[#allocation4 + $0x30] sm:$0xff] }
  0xec   : > { %v2822_v7 = vpack.c.bf16 %v758_v60, %v757_v58  ;;  %v2830_v20 = vpack.c.bf16 %v762_v17, %v761_v15  ;;  %v2862_v22 = vpack.c.bf16 %v876_v19, %v875_v18  ;;  %v771_v60 = vld [vmem:[#allocation4 + $0x70] sm:$0xff]  ;;  %v978_v15 = vld [vmem:[#allocation4 + $0x108] sm:$0xff] }
  0xed   : > { %v3549_v32 = vsel %vm733_vm0, %v1612_v13, %v1613_v25  ;;  %v3553_v33 = vsel %vm1619_vm1, %v1617_v14, %v1618_v26  ;;  %v3566_v48 = vsel %vm512_vm3, %v1603_v41, %v1604_v38  ;;  %v3576_v51 = vsel %vm1600_vm2, %v1597_v45, %v1598_v16  ;;  %v873_v14 = vld [vmem:[#allocation4 + $0x90] sm:$0xff]  ;;  %v764_v25 = vld [vmem:[#allocation4 + $0x38] sm:$0xff]  ;;  %v880_v38 = vld [vmem:[#allocation4 + $0xc8] sm:$0xff] }
  0xee   : > { %2801 = vmatpush3.bf16.msra.mxu0 %v2798_v3  ;;  %1827 = vrot.lane.b32.xlu1 %v3549_v32, %s3250_s13  ;;  %v1790_v34 = vpop.permute.xlu0 %1789  ;;  %v1792_v37 = vpop.permute.xlu1 %1791  ;;  %v2826_v13 = vpack.c.bf16 %v760_v11, %v759_v9  ;;  %v874_v3 = vld [vmem:[#allocation4 + $0x98] sm:$0xff]  ;;  %v2834_v26 = vpack.c.bf16 %v764_v25, %v763_v23  ;;  %v2850_v8 = vpack.c.bf16 %v772_v61, %v771_v60  ;;  %v885_v9 = vld [vmem:[#allocation4 + $0xf0] sm:$0xff] }
  0xef   : > { %2803 = vmatprep.subr.bf16.mxu0 %v2802_v27  ;;  %1713 = vrot.lane.b32.xlu0 %v3465_v4, %s3251_s12  ;;  %v1795_v36 = vmul.f32 %v3541_v30, %v1790_v34  ;;  %v1796_v42 = vmul.f32 %v3541_v30, %v1792_v37  ;;  %v2858_v16 = vpack.c.bf16 %v874_v3, %v873_v14  ;;  %v765_v34 = vld [vmem:[#allocation4 + $0x40] sm:$0xff]  ;;  %v768_v41 = vld [vmem:[#allocation4 + $0x58] sm:$0xff] }
  0xf0   : > { %2823 = vmatprep.subr.bf16.mxu1 %v2822_v7  ;;  %v879_v37 = vld [vmem:[#allocation4 + $0xc0] sm:$0xff]  ;;  %v886_v11 = vld [vmem:[#allocation4 + $0xf8] sm:$0xff] }
  0xf1   : > { %2825 = vmatpush3.bf16.msra.mxu1 %v2822_v7  ;;  %v2870_v39 = vpack.c.bf16 %v880_v38, %v879_v37  ;;  %v2882_v14 = vpack.c.bf16 %v886_v11, %v885_v9  ;;  %v977_v3 = vld [vmem:[#allocation4 + $0x100] sm:$0xff] }
  0xf2   : > { %2805 = vmatpush3.bf16.msra.mxu0 %v2802_v27  ;;  %1715 = vrot.lane.b32.xlu1 %v3454_v1, %s3251_s12  ;;  %v877_v27 = vld [vmem:[#allocation4 + $0xb0] sm:$0xff]  ;;  %v3591_v17 = vpack.c.bf16 %v978_v15, %v977_v3 }
  0xf3   : > { %2807 = vmatprep.subr.bf16.mxu0 %v2806_v35  ;;  %1799 = vrot.lane.b32.xlu0 %v1795_v36, %s3252_s14  ;;  %v2866_v29 = vpack.c.bf16 %v878_v28, %v877_v27 }
  0xf4   : > { %2827 = vmatprep.subr.bf16.mxu1 %v2826_v13 }
  0xf5   : > { %2829 = vmatpush3.bf16.msra.mxu1 %v2826_v13 }
  0xf6   : > { %2809 = vmatpush3.bf16.msra.mxu0 %v2806_v35  ;;  %1801 = vrot.lane.b32.xlu1 %v1796_v42, %s3252_s14  ;;  %v766_v35 = vld [vmem:[#allocation4 + $0x48] sm:$0xff]  ;;  %v2842_v42 = vpack.c.bf16 %v768_v41, %v767_v40 }
  0xf7   : > { %2811 = vmatprep.subr.bf16.mxu0 %v2810_v44  ;;  %1687 = vrot.lane.b32.xlu0 %v3566_v48, %s3253_s17  ;;  %v2838_v36 = vpack.c.bf16 %v766_v35, %v765_v34  ;;  %v3262_v34 = vmov 8  }
  0xf8   : > { %2831 = vmatprep.subr.bf16.mxu1 %v2830_v20 }
  0xf9   : > { %2833 = vmatpush3.bf16.msra.mxu1 %v2830_v20 }
  0xfa   : > { %2813 = vmatpush3.bf16.msra.mxu0 %v2810_v44  ;;  %1689 = vrot.lane.b32.xlu1 %v3572_v50, %s3253_s17  ;;  %v882_v44 = vld [vmem:[#allocation4 + $0xd8] sm:$0xff] }
  0xfb   : > { %2815 = vmatprep.subr.bf16.mxu0 %v2814_v49  ;;  %1771 = vrot.lane.b32.xlu0 %v3566_v48, %s3254_s19  ;;  %v2874_v45 = vpack.c.bf16 %v882_v44, %v881_v43 }
  0xfc   : > { %2835 = vmatprep.subr.bf16.mxu1 %v2834_v26 }
  0xfd   : > { %2837 = vmatpush3.bf16.msra.mxu1 %v2834_v26  ;;  %v3259_v26 = vmov 6  }
  0xfe   : > { %2817 = vmatpush3.bf16.msra.mxu0 %v2814_v49  ;;  %1773 = vrot.lane.b32.xlu1 %v3572_v50, %s3254_s19  ;;  %v2846_v49 = vpack.c.bf16 %v770_v47, %v769_v46 }
  0xff   : > { %2819 = vmatprep.subr.bf16.mxu0 %v2818_v54  ;;  %1893 = vrot.lane.b32.xlu0 %v3531_v21, %s3255_s20 }
 0x100   : > { %2839 = vmatprep.subr.bf16.mxu1 %v2838_v36  ;;  %3120 = vset.pattern.permute.xlu1 %v3259_v26 }
 0x101   : > { %2841 = vmatpush3.bf16.msra.mxu1 %v2838_v36 }
 0x102   : > { %2821 = vmatpush3.bf16.msra.mxu0 %v2818_v54  ;;  %1895 = vrot.lane.b32.xlu1 %v3549_v32, %s3255_s20 }
 0x103   : > { %2855 = vmatprep.subr.bf16.mxu0 %v2854_v12  ;;  %2843 = vmatprep.subr.bf16.mxu1 %v2842_v42 }
 0x105   : > { %2455 = vmatmul.mubr.f32.vlgmr.msra.gmra.mrb[4].mxu0 %v3503_v2  ;;  %2845 = vmatpush3.bf16.msra.mxu1 %v2842_v42 }
 0x106   : > { %2457 = vmatprep.mubr.f32.mxu0 %v3493_v62  ;;  %2857 = vmatpush3.bf16.msra.mxu0 %v2854_v12 }
 0x107   : > { %2859 = vmatprep.subr.bf16.mxu0 %v2858_v16  ;;  %2847 = vmatprep.subr.bf16.mxu1 %v2846_v49 }
 0x109   : > { %2458 = vmatmul.mubr.f32.gmra.mrb[6].mxu0 %v3507_v10  ;;  %2849 = vmatpush3.bf16.msra.mxu1 %v2846_v49 }
 0x10a   : > { %2861 = vmatpush3.bf16.msra.mxu0 %v2858_v16  ;;  %2851 = vmatprep.subr.bf16.mxu1 %v2850_v8 }
 0x10b   : > { %2863 = vmatprep.subr.bf16.mxu0 %v2862_v22 }
 0x10d   : > { %2853 = vmatpush3.bf16.msra.mxu1 %v2850_v8 }
 0x10e   : > { %2865 = vmatpush3.bf16.msra.mxu0 %v2862_v22  ;;  %2887 = vmatprep.subr.bf16.mxu1 %v3591_v17 }
 0x10f   : > { %2867 = vmatprep.subr.bf16.mxu0 %v2866_v29 }
 0x112   : > { %2869 = vmatpush3.bf16.msra.mxu0 %v2866_v29 }
 0x113   : > { %2871 = vmatprep.subr.bf16.mxu0 %v2870_v39 }
 0x116   : > { %2873 = vmatpush3.bf16.msra.mxu0 %v2870_v39 }
 0x117   : > { %2875 = vmatprep.subr.bf16.mxu0 %v2874_v45 }
 0x11a   : > { %2877 = vmatpush3.bf16.msra.mxu0 %v2874_v45 }
 0x11b   : > { %2879 = vmatprep.subr.bf16.mxu0 %v2878_v55 }
 0x11e   : > { %2881 = vmatpush3.bf16.msra.mxu0 %v2878_v55 }
 0x11f   : > { %2883 = vmatprep.subr.bf16.mxu0 %v2882_v14 }
 0x122   : > { %2885 = vmatpush3.bf16.msra.mxu0 %v2882_v14 }
 0x15d   : > { %v1826_v54 = vpop.permute.xlu0 %1825 }
 0x15e   : > { %v1831_v58 = vmul.f32 %v3541_v30, %v1826_v54 }
 0x160   : > { %1835 = vrot.lane.b32.xlu0 %v1831_v58, %s3257_s21  ;;  %v1828_v7 = vpop.permute.xlu1 %1827 }
 0x161   : > { %v1832_v12 = vmul.f32 %v3541_v30, %v1828_v7  ;;  %v1714_v13 = vpop.permute.xlu0 %1713 }
 0x162   : > { %v1719_v19 = vmul.f32 %v3541_v30, %v1714_v13 }
 0x163   : > { %1837 = vrot.lane.b32.xlu1 %v1832_v12, %s3257_s21 }
 0x164   : > { %1929 = vrot.lane.b32.xlu0 %v3535_v24, %s3258_s22  ;;  %v1716_v16 = vpop.permute.xlu1 %1715 }
 0x165   : > { %v1800_v18 = vpop.permute.xlu0 %1799  ;;  %v1720_v24 = vmul.f32 %v3541_v30, %v1716_v16 }
 0x167   : > { %1931 = vrot.lane.b32.xlu1 %v3553_v33, %s3258_s22 }
 0x168   : > { %1667 = vrot.lane.b32.xlu0 %v3576_v51, %s3249_s29  ;;  %v1802_v20 = vpop.permute.xlu1 %1801 }
 0x169   : > { %v1688_v22 = vpop.permute.xlu0 %1687 }
 0x16b   : > { %1669 = vrot.lane.b32.xlu1 %v3545_v31, %s3249_s29  ;;  %s3269_s29 = smov 5  }
 0x16c   : > { %1723 = vrot.lane.b32.xlu0 %v1719_v19, %s3257_s21  ;;  %v1690_v23 = vpop.permute.xlu1 %1689 }
 0x16d   : > { %v1772_v25 = vpop.permute.xlu0 %1771  ;;  %v1694_v29 = vmul.f32 %v3541_v30, %v1690_v23 }
 0x16e   : > { %v1777_v33 = vmul.f32 %v3541_v30, %v1772_v25 }
 0x16f   : > { %1725 = vrot.lane.b32.xlu1 %v1720_v24, %s3257_s21  ;;  %v2136_v24 = vld [vmem:[%s3879_s3] ss:$0 sm:$0xff] }
 0x170   : > { %1875 = vrot.lane.b32.xlu0 %v3465_v4, %s3260_s15  ;;  %v1774_v51 = vpop.permute.xlu1 %1773  ;;  %v1805_v27 = vadd.f32 %v1800_v18, %v1777_v33  ;;  %v1693_v4 = vmul.f32 %v3541_v30, %v1688_v22 }
 0x171   : > { %v1778_v28 = vmul.f32 %v3541_v30, %v1774_v51 }
 0x173   : > { %1877 = vrot.lane.b32.xlu1 %v3454_v1, %s3260_s15  ;;  %v1806_v31 = vadd.f32 %v1802_v20, %v1778_v28  ;;  %v1894_v1 = vpop.permute.xlu0 %1893 }
 0x174   : > { %1912 = vperm.xlu0 %3117, %v3541_v30   ;;  %v1896_v35 = vpop.permute.xlu1 %1895  ;;  %v1899_v37 = vmul.f32 %v3541_v30, %v1894_v1 }
 0x175   : > { %v1900_v36 = vmul.f32 %v3541_v30, %v1896_v35 }
 0x177   : > { %1627 = vrot.lane.b32.xlu1 %v3503_v2, %s3261_s23 }
 0x178   : > { %3118 = vset.pattern.permute.xlu0 %v3262_v34 }
 0x179   : > { %1948 = vperm.xlu0 %3118, %v3541_v30  }
 0x17b   : > { %1699 = vrot.lane.b32.xlu1 %v1694_v29, %s3252_s14 }
 0x17d   : > { %1697 = vrot.lane.b32.xlu0 %v1693_v4, %s3252_s14 }
 0x17e   : > { %3119 = vset.pattern.permute.xlu0 %v3247_v0 }
 0x17f   : > { %1905 = vrot.lane.b32.xlu1 %v1900_v36, %s3252_s14 }
 0x181   : > { %1903 = vrot.lane.b32.xlu0 %v1899_v37, %s3252_s14 }
 0x1b8   : > { %v2380_v38 = vpop.f32.mrb[0].mxu0  ;;  %v2418_v39 = vpop.f32.mrb[0].mxu1 }
 0x1b9   : > { %v507_v40 = vrot.slane %v2380_v38, 7  ;;  %v487_v41 = vpop.f32.mrb[1].mxu0  ;;  %v604_v42 = vpop.f32.mrb[1].mxu1  ;;  %v980_v38 = vld [vmem:[#allocation4 + $0x118] sm:$0xff] }
 0x1ba   : > { %v506_v43 = vrot.slane %v487_v41, 7 }
 0x1bc   : > { %v515_v44 = vsel %vm512_vm3, %v506_v43, %v507_v40  ;;  %v2383_v45 = vpop.f32.mrb[2].mxu0  ;;  %v2421_v46 = vpop.f32.mrb[2].mxu1 }
 0x1bd   : > { %v624_v47 = vadd.f32 %v2418_v39, %v515_v44  ;;  %v509_v49 = vrot.slane %v2383_v45, 7  ;;  %v497_v52 = vpop.f32.mrb[3].mxu0  ;;  %v614_v53 = vpop.f32.mrb[3].mxu1  ;;  %v982_v44 = vld [vmem:[#allocation4 + $0x128] sm:$0xff] }
 0x1be   : > { %v508_v0 = vrot.slane %v497_v52, 7 }
 0x1bf   : > { %v516_v54 = vsel %vm512_vm3, %v509_v49, %v506_v43  ;;  %v981_v43 = vld [vmem:[#allocation4 + $0x120] sm:$0xff] }
 0x1c0   : > { %v623_v55 = vadd.f32 %v604_v42, %v516_v54  ;;  %v513_v58 = vsel %vm512_vm3, %v508_v0, %v509_v49  ;;  %v514_v60 = vsel %vm512_vm3, %v507_v40, %v508_v0  ;;  %v984_v49 = vld [vmem:[#allocation4 + $0x138] sm:$0xff]  ;;  %v3263_v0 = vmov 2  }
 0x1c1   : > { %v626_v61 = vadd.f32 %v2421_v46, %v513_v58  ;;  %v625_v7 = vadd.f32 %v614_v53, %v514_v60  ;;  %v2894_v46 = vpack.c.bf16 %v982_v44, %v981_v43  ;;  %v986_v53 = vld [vmem:[#allocation4 + $0x148] sm:$0xff]  ;;  %v988_v58 = vld [vmem:[#allocation4 + $0x158] sm:$0xff] }
 0x1c2   : > { %v1110_v44 = vld [vmem:[#allocation6 + $0x28] sm:$0xff] }
 0x1d2   : > { %v1836_v8 = vpop.permute.xlu0 %1835 }
 0x1d3   : > { %v1841_v19 = vadd.f32 %v1836_v8, %v1805_v27 }
 0x1d5   : > { %v1838_v9 = vpop.permute.xlu1 %1837 }
 0x1d6   : > { %v1930_v11 = vpop.permute.xlu0 %1929  ;;  %v1842_v28 = vadd.f32 %v1838_v9, %v1806_v31  ;;  %v979_v31 = vld [vmem:[#allocation4 + $0x110] sm:$0xff] }
 0x1d7   : > { %v1935_v12 = vmul.f32 %v3541_v30, %v1930_v11  ;;  %v2890_v42 = vpack.c.bf16 %v980_v38, %v979_v31  ;;  %v991_v9 = vld [vmem:[#allocation4 + $0x170] sm:$0xff]  ;;  %v992_v11 = vld [vmem:[#allocation4 + $0x178] sm:$0xff] }
 0x1d8   : > { %v2456_v13 = vpop.f32.mrb[4].mxu0 }
 0x1d9   : > { %v730_v14 = vrot.slane %v2456_v13, 1  ;;  %v710_v3 = vpop.f32.mrb[5].mxu0  ;;  %1939 = vrot.lane.b32.xlu0 %v1935_v12, %s3257_s21  ;;  %v1932_v15 = vpop.permute.xlu1 %1931  ;;  %v2914_v12 = vpack.c.bf16 %v992_v11, %v991_v9  ;;  %v1113_v9 = vld [vmem:[#allocation6 + $0x40] sm:$0xff]  ;;  %v1114_v11 = vld [vmem:[#allocation6 + $0x48] sm:$0xff] }
 0x1da   : > { %v729_v16 = vrot.slane %v710_v3, 1  ;;  %v1936_v18 = vmul.f32 %v3541_v30, %v1932_v15  ;;  %v1668_v13 = vpop.permute.xlu0 %1667 }
 0x1dc   : > { %v736_v20 = vsel %vm733_vm0, %v729_v16, %v730_v14  ;;  %v2459_v22 = vpop.f32.mrb[6].mxu0  ;;  %1941 = vrot.lane.b32.xlu1 %v1936_v18, %s3257_s21 }
 0x1dd   : > { %v738_v23 = vadd.f32 %v736_v20, %v623_v55  ;;  %v732_v25 = vrot.slane %v2459_v22, 1  ;;  %v720_v26 = vpop.f32.mrb[7].mxu0  ;;  %1645 = vrot.lane.b32.xlu0 %v3507_v10, %s3261_s23  ;;  %v987_v55 = vld [vmem:[#allocation4 + $0x150] sm:$0xff]  ;;  %v1670_v3 = vpop.permute.xlu1 %1669 }
 0x1de   : > { %v731_v33 = vrot.slane %v720_v26, 1  ;;  %v2906_v60 = vpack.c.bf16 %v988_v58, %v987_v55  ;;  %v1225_v55 = vld [vmem:[#allocation6 + $0xb0] sm:$0xff]  ;;  %v1226_v58 = vld [vmem:[#allocation6 + $0xb8] sm:$0xff] }
 0x1df   : > { %v737_v51 = vsel %vm733_vm0, %v732_v25, %v729_v16  ;;  %v749_v27 = vadd.f32 %v2136_v24, %v738_v23  ;;  %v1673_v23 = vmul.f32 %v3541_v30, %v1668_v13  ;;  %v1227_v13 = vld [vmem:[#allocation6 + $0xc0] sm:$0xff] }
 0x1e0   : > { %v741_v29 = vadd.f32 %v737_v51, %v626_v61  ;;  %v734_v34 = vsel %vm733_vm0, %v731_v33, %v732_v25  ;;  %v735_v4 = vsel %vm733_vm0, %v730_v14, %v731_v33  ;;  %1853 = vrot.lane.b32.xlu1 %v1841_v19, %s3257_s21  ;;  %v989_v61 = vld [vmem:[#allocation4 + $0x160] sm:$0xff]  ;;  %v1724_v14 = vpop.permute.xlu0 %1723 }
 0x1e1   : > { %v739_v35 = vadd.f32 %v735_v4, %v624_v47  ;;  %v740_v36 = vadd.f32 %v734_v34, %v625_v7  ;;  %1808 = vperm.xlu0 %3119, %v3541_v30   ;;  %v753_v10 = vmul.f32 %v749_v27, %v3483_v57  ;;  %v983_v47 = vld [vmem:[#allocation4 + $0x130] sm:$0xff]  ;;  %v990_v7 = vld [vmem:[#allocation4 + $0x168] sm:$0xff]  ;;  %v1726_v16 = vpop.permute.xlu1 %1725  ;;  %v1219_v4 = vld [vmem:[#allocation6 + $0x80] sm:$0xff] }
 0x1e2   : > { %v752_v41 = vadd.f32 %v2136_v24, %v741_v29  ;;  %v2898_v52 = vpack.c.bf16 %v984_v49, %v983_v47  ;;  %v2910_v8 = vpack.c.bf16 %v990_v7, %v989_v61  ;;  %v1105_v29 = vld [vmem:[#allocation6] sm:$0xff]  ;;  %v1106_v34 = vld [vmem:[#allocation6 + $0x8] sm:$0xff] }
 0x1e3   : > { %v750_v1 = vadd.f32 %v2136_v24, %v739_v35  ;;  %2492 = vmatprep.mubr.f32.mxu1 %v753_v10  ;;  %2530 = vmatprep.mubr.f32.mxu0 %v753_v10  ;;  %v751_v37 = vadd.f32 %v2136_v24, %v740_v36  ;;  %v1674_v24 = vmul.f32 %v3541_v30, %v1670_v3 }
 0x1e4   : > { %1855 = vrot.lane.b32.xlu1 %v1842_v28, %s3257_s21  ;;  %v756_v45 = vmul.f32 %v752_v41, %v3495_v63  ;;  %v1876_v15 = vpop.permute.xlu0 %1875  ;;  %v2918_v36 = vpack.c.bf16 %v1106_v34, %v1105_v29  ;;  %v1222_v41 = vld [vmem:[#allocation6 + $0x98] sm:$0xff]  ;;  %v1229_v29 = vld [vmem:[#allocation6 + $0xd0] sm:$0xff] }
 0x1e5   : > { %v754_v39 = vmul.f32 %v750_v1, %v3497_v5  ;;  %v755_v40 = vmul.f32 %v751_v37, %v3481_v56  ;;  %v1878_v19 = vpop.permute.xlu1 %1877  ;;  %v1881_v35 = vmul.f32 %v3541_v30, %v1876_v15  ;;  %v1107_v1 = vld [vmem:[#allocation6 + $0x10] sm:$0xff]  ;;  %v1108_v37 = vld [vmem:[#allocation6 + $0x18] sm:$0xff]  ;;  %v2934_v15 = vpack.c.bf16 %v1114_v11, %v1113_v9 }
 0x1e6   : > { %2919 = vmatprep.subr.bf16.mxu0 %v2918_v36  ;;  %v1882_v47 = vmul.f32 %v3541_v30, %v1878_v19  ;;  %v1230_v34 = vld [vmem:[#allocation6 + $0xd8] sm:$0xff] }
 0x1e7   : > { %2493 = vmatmul.mubr.f32.vlgmr.msra.gmra.mrb[4].mxu1 %v754_v39  ;;  %2531 = vmatmul.mubr.f32.vlgmr.msra.gmra.mrb[8].mxu0 %v754_v39 }
 0x1e8   : > { %2889 = vmatpush3.bf16.msra.mxu1 %v3591_v17  ;;  %2495 = vmatprep.mubr.f32.mxu1 %v755_v40  ;;  %v985_v17 = vld [vmem:[#allocation4 + $0x140] sm:$0xff] }
 0x1e9   : > { %2533 = vmatprep.mubr.f32.mxu0 %v755_v40  ;;  %1629 = vrot.lane.b32.xlu1 %v3493_v62, %s3261_s23  ;;  %v2902_v54 = vpack.c.bf16 %v986_v53, %v985_v17  ;;  %v3661_v22 = vpop.permute.xlu1 %1627 }
 0x1ea   : > { %2891 = vmatprep.subr.bf16.mxu1 %v2890_v42  ;;  %2921 = vmatpush3.bf16.msra.mxu0 %v2918_v36 }
 0x1eb   : > { %2496 = vmatmul.mubr.f32.gmra.mrb[6].mxu1 %v756_v45  ;;  %2534 = vmatmul.mubr.f32.gmra.mrb[10].mxu0 %v756_v45 }
 0x1ec   : > { %2893 = vmatpush3.bf16.msra.mxu1 %v2890_v42  ;;  %2568 = vmatprep.mubr.f32.mxu1 %v753_v10  ;;  %v1220_v10 = vld [vmem:[#allocation6 + $0x88] sm:$0xff]  ;;  %v1109_v42 = vld [vmem:[#allocation6 + $0x20] sm:$0xff] }
 0x1ed   : > { %1732 = vperm.xlu1 %3120, %v3541_v30   ;;  %2895 = vmatprep.subr.bf16.mxu1 %v2894_v46  ;;  %v1700_v26 = vpop.permute.xlu1 %1699  ;;  %v2950_v38 = vpack.c.bf16 %v1220_v10, %v1219_v4  ;;  %v2926_v17 = vpack.c.bf16 %v1110_v44, %v1109_v42 }
 0x1ee   : > { %v1704_v51 = vadd.f32 %v1700_v26, %v1674_v24  ;;  %v3139_v24 = vld [vmem:[%s3451_s24 + $0x8] sm:$0xff]  ;;  %v3140_v26 = vld [vmem:[%s3451_s24 + $0x10] sm:$0xff]  ;;  %s3267_s24 = smov 126  }
 0x1f0   : > { %2897 = vmatpush3.bf16.msra.mxu1 %v2894_v46  ;;  %v1730_v28 = vadd.f32 %v1726_v16, %v1704_v51  ;;  %v1224_v46 = vld [vmem:[#allocation6 + $0xa8] sm:$0xff]  ;;  %v1115_v51 = vld [vmem:[#allocation6 + $0x50] sm:$0xff] }
 0x1f1   : > { %3121 = vset.pattern.permute.xlu1 %v3263_v0  ;;  %2899 = vmatprep.subr.bf16.mxu1 %v2898_v52  ;;  %v1111_v0 = vld [vmem:[#allocation6 + $0x30] sm:$0xff] }
 0x1f2   : > { %1886 = vperm.xlu1 %3121, %v3541_v30   ;;  %1751 = vrot.lane.b32.xlu0 %v1730_v28, %s3264_s16 }
 0x1f3   : > { %v3657_v18 = vpop.permute.xlu0 %1912 }
 0x1f4   : > { %2901 = vmatpush3.bf16.msra.mxu1 %v2898_v52  ;;  %v1906_v52 = vpop.permute.xlu1 %1905 }
 0x1f5   : > { %2903 = vmatprep.subr.bf16.mxu1 %v2902_v54 }
 0x1f8   : > { %2905 = vmatpush3.bf16.msra.mxu1 %v2902_v54  ;;  %v3659_v20 = vpop.permute.xlu0 %1948  ;;  %v1112_v54 = vld [vmem:[#allocation6 + $0x38] sm:$0xff] }
 0x1f9   : > { %2907 = vmatprep.subr.bf16.mxu1 %v2906_v60  ;;  %v2930_v30 = vpack.c.bf16 %v1112_v54, %v1111_v0  ;;  %v1326_v0 = vld [vmem:[#allocation6 + $0x108] sm:$0xff] }
 0x1fc   : > { %2909 = vmatpush3.bf16.msra.mxu1 %v2906_v60  ;;  %v1698_v25 = vpop.permute.xlu0 %1697  ;;  %v1910_v60 = vadd.f32 %v1906_v52, %v1882_v47  ;;  %v1234_v52 = vld [vmem:[#allocation6 + $0xf8] sm:$0xff] }
 0x1fd   : > { %2911 = vmatprep.subr.bf16.mxu1 %v2910_v8  ;;  %v1703_v33 = vadd.f32 %v1698_v25, %v1673_v23 }
 0x1ff   : > { %v1729_v27 = vadd.f32 %v1724_v14, %v1703_v33  ;;  %v1228_v14 = vld [vmem:[#allocation6 + $0xc8] sm:$0xff] }
 0x200   : > { %2913 = vmatpush3.bf16.msra.mxu1 %v2910_v8  ;;  %v1904_v31 = vpop.permute.xlu0 %1903  ;;  %v2962_v8 = vpack.c.bf16 %v1226_v58, %v1225_v55  ;;  %v2966_v16 = vpack.c.bf16 %v1228_v14, %v1227_v13 }
 0x201   : > { %2915 = vmatprep.subr.bf16.mxu1 %v2914_v12  ;;  %1749 = vrot.lane.b32.xlu1 %v1729_v27, %s3264_s16  ;;  %v1909_v49 = vadd.f32 %v1904_v31, %v1881_v35  ;;  %v1116_v27 = vld [vmem:[#allocation6 + $0x58] sm:$0xff]  ;;  %v2970_v35 = vpack.c.bf16 %v1230_v34, %v1229_v29  ;;  %v1635_v31 = vrot.slane %v3661_v22, 6 }
 0x202   : > { %v2938_v28 = vpack.c.bf16 %v1116_v27, %v1115_v51 }
 0x204   : > { %2917 = vmatpush3.bf16.msra.mxu1 %v2914_v12 }
 0x205   : > { %2951 = vmatprep.subr.bf16.mxu1 %v2950_v38 }
 0x207   : > { %2569 = vmatmul.mubr.f32.vlgmr.msra.gmra.mrb[8].mxu1 %v754_v39  ;;  %v2922_v39 = vpack.c.bf16 %v1108_v37, %v1107_v1  ;;  %v1117_v1 = vld [vmem:[#allocation6 + $0x60] sm:$0xff]  ;;  %v1118_v37 = vld [vmem:[#allocation6 + $0x68] sm:$0xff] }
 0x208   : > { %2571 = vmatprep.mubr.f32.mxu1 %v755_v40  ;;  %v1221_v40 = vld [vmem:[#allocation6 + $0x90] sm:$0xff]  ;;  %2953 = vmatpush3.bf16.msra.mxu1 %v2950_v38  ;;  %v1640_v38 = vrot.slane %v3661_v22, 7 }
 0x209   : > { %v2954_v43 = vpack.c.bf16 %v1222_v41, %v1221_v40  ;;  %2923 = vmatprep.subr.bf16.mxu0 %v2922_v39  ;;  %v1231_v40 = vld [vmem:[#allocation6 + $0xe0] sm:$0xff]  ;;  %v1232_v41 = vld [vmem:[#allocation6 + $0xe8] sm:$0xff] }
 0x20a   : > { %2925 = vmatpush3.bf16.msra.mxu0 %v2922_v39  ;;  %v2942_v39 = vpack.c.bf16 %v1118_v37, %v1117_v1  ;;  %v2974_v42 = vpack.c.bf16 %v1232_v41, %v1231_v40 }
 0x20b   : > { %2572 = vmatmul.mubr.f32.gmra.mrb[10].mxu1 %v756_v45  ;;  %v1223_v45 = vld [vmem:[#allocation6 + $0xa0] sm:$0xff]  ;;  %2955 = vmatprep.subr.bf16.mxu1 %v2954_v43 }
 0x20c   : > { %v2958_v53 = vpack.c.bf16 %v1224_v46, %v1223_v45  ;;  %2957 = vmatpush3.bf16.msra.mxu1 %v2954_v43  ;;  %2927 = vmatprep.subr.bf16.mxu0 %v2926_v17  ;;  %v1119_v45 = vld [vmem:[#allocation6 + $0x70] sm:$0xff]  ;;  %v1120_v46 = vld [vmem:[#allocation6 + $0x78] sm:$0xff] }
 0x20d   : > { %v2946_v47 = vpack.c.bf16 %v1120_v46, %v1119_v45 }
 0x20e   : > { %2959 = vmatprep.subr.bf16.mxu1 %v2958_v53  ;;  %2929 = vmatpush3.bf16.msra.mxu0 %v2926_v17 }
 0x20f   : > { %2931 = vmatprep.subr.bf16.mxu0 %v2930_v30 }
 0x210   : > { %2961 = vmatpush3.bf16.msra.mxu1 %v2958_v53  ;;  %v1325_v53 = vld [vmem:[#allocation6 + $0x100] sm:$0xff] }
 0x211   : > { %2963 = vmatprep.subr.bf16.mxu1 %v2962_v8  ;;  %v2982_v54 = vpack.c.bf16 %v1326_v0, %v1325_v53 }
 0x212   : > { %2933 = vmatpush3.bf16.msra.mxu0 %v2930_v30 }
 0x213   : > { %2935 = vmatprep.subr.bf16.mxu0 %v2934_v15 }
 0x214   : > { %2965 = vmatpush3.bf16.msra.mxu1 %v2962_v8 }
 0x215   : > { %2967 = vmatprep.subr.bf16.mxu1 %v2966_v16 }
 0x216   : > { %2937 = vmatpush3.bf16.msra.mxu0 %v2934_v15 }
 0x217   : > { %2939 = vmatprep.subr.bf16.mxu0 %v2938_v28 }
 0x218   : > { %2969 = vmatpush3.bf16.msra.mxu1 %v2966_v16 }
 0x219   : > { %2971 = vmatprep.subr.bf16.mxu1 %v2970_v35 }
 0x21a   : > { %2941 = vmatpush3.bf16.msra.mxu0 %v2938_v28 }
 0x21b   : > { %2943 = vmatprep.subr.bf16.mxu0 %v2942_v39 }
 0x21c   : > { %2973 = vmatpush3.bf16.msra.mxu1 %v2970_v35  ;;  %v2137_v35 = vld [vmem:[%s3881_s5] ss:$0 sm:$0xff] }
 0x21d   : > { %2975 = vmatprep.subr.bf16.mxu1 %v2974_v42 }
 0x21e   : > { %2945 = vmatpush3.bf16.msra.mxu0 %v2942_v39 }
 0x21f   : > { %2947 = vmatprep.subr.bf16.mxu0 %v2946_v47 }
 0x220   : > { %2977 = vmatpush3.bf16.msra.mxu1 %v2974_v42 }
 0x222   : > { %2949 = vmatpush3.bf16.msra.mxu0 %v2946_v47 }
 0x223   : > { %2983 = vmatprep.subr.bf16.mxu0 %v2982_v54 }
 0x24b   : > { %v1940_v61 = vpop.permute.xlu0 %1939 }
 0x24c   : > { %v1945_v7 = vadd.f32 %v1940_v61, %v1909_v49  ;;  %v1233_v49 = vld [vmem:[#allocation6 + $0xf0] sm:$0xff] }
 0x24d   : > { %v2978_v17 = vpack.c.bf16 %v1234_v52, %v1233_v49  ;;  %v1327_v52 = vld [vmem:[#allocation6 + $0x110] sm:$0xff] }
 0x24e   : > { %v1942_v12 = vpop.permute.xlu1 %1941  ;;  %1965 = vrot.lane.b32.xlu0 %v1945_v7, %s3265_s18 }
 0x24f   : > { %v1946_v3 = vadd.f32 %v1942_v12, %v1910_v60  ;;  %2979 = vmatprep.subr.bf16.mxu1 %v2978_v17 }
 0x250   : > { %2981 = vmatpush3.bf16.msra.mxu1 %v2978_v17  ;;  %v1328_v17 = vld [vmem:[#allocation6 + $0x118] sm:$0xff] }
 0x251   : > { %1967 = vrot.lane.b32.xlu1 %v1946_v3, %s3265_s18 }
 0x252   : > { %v1854_v19 = vpop.permute.xlu1 %1853 }
 0x253   : > { %v1859_v23 = vmul.f32 %v3139_v24, %v1854_v19 }
 0x255   : > { %1863 = vrot.lane.b32.xlu0 %v1859_v23, %s3248_s28 }
 0x256   : > { %v1856_v25 = vpop.permute.xlu1 %1855 }
 0x257   : > { %v1860_v33 = vmul.f32 %v3140_v26, %v1856_v25 }
 0x259   : > { %1865 = vrot.lane.b32.xlu1 %v1860_v33, %s3248_s28  ;;  %s3268_s28 = smov 127  }
 0x25b   : > { %v3671_v4 = vpop.permute.xlu1 %1629 }
 0x25c   : > { %v1636_v36 = vrot.slane %v3671_v4, 6  ;;  %v1641_v10 = vrot.slane %v3671_v4, 7 }
 0x25e   : > { %v3681_v43 = vsel %vm512_vm3, %v1640_v38, %v1641_v10  ;;  %v3687_v44 = vsel %vm1600_vm2, %v1635_v31, %v1636_v36 }
 0x2ba   : > { %v2494_v55 = vpop.f32.mrb[4].mxu1  ;;  %v2532_v58 = vpop.f32.mrb[8].mxu0 }
 0x2bb   : > { %v859_v60 = vrot.slane %v2494_v55, 7  ;;  %v839_v61 = vpop.f32.mrb[5].mxu1  ;;  %v953_v7 = vpop.f32.mrb[9].mxu0 }
 0x2bc   : > { %v858_v30 = vrot.slane %v839_v61, 7 }
 0x2be   : > { %v864_v8 = vsel %vm512_vm3, %v858_v30, %v859_v60  ;;  %v2497_v9 = vpop.f32.mrb[6].mxu1  ;;  %v2535_v11 = vpop.f32.mrb[10].mxu0 }
 0x2bf   : > { %v973_v12 = vadd.f32 %v2532_v58, %v864_v8  ;;  %v861_v13 = vrot.slane %v2497_v9, 7  ;;  %v849_v14 = vpop.f32.mrb[7].mxu1  ;;  %v963_v3 = vpop.f32.mrb[11].mxu0 }
 0x2c0   : > { %v860_v15 = vrot.slane %v849_v14, 7  ;;  %v1333_v14 = vld [vmem:[#allocation6 + $0x140] sm:$0xff] }
 0x2c1   : > { %v865_v16 = vsel %vm512_vm3, %v861_v13, %v858_v30  ;;  %v1330_v30 = vld [vmem:[#allocation6 + $0x128] sm:$0xff] }
 0x2c2   : > { %v972_v19 = vadd.f32 %v953_v7, %v865_v16  ;;  %v862_v24 = vsel %vm512_vm3, %v860_v15, %v861_v13  ;;  %v863_v23 = vsel %vm512_vm3, %v859_v60, %v860_v15  ;;  %v2986_v60 = vpack.c.bf16 %v1328_v17, %v1327_v52  ;;  %v1329_v7 = vld [vmem:[#allocation6 + $0x120] sm:$0xff]  ;;  %v1336_v16 = vld [vmem:[#allocation6 + $0x158] sm:$0xff] }
 0x2c3   : > { %v975_v25 = vadd.f32 %v2535_v11, %v862_v24  ;;  %v974_v26 = vadd.f32 %v963_v3, %v863_v23  ;;  %v2990_v9 = vpack.c.bf16 %v1330_v30, %v1329_v7  ;;  %v1331_v11 = vld [vmem:[#allocation6 + $0x130] sm:$0xff]  ;;  %v1334_v3 = vld [vmem:[#allocation6 + $0x148] sm:$0xff]  ;;  %v1337_v24 = vld [vmem:[#allocation6 + $0x160] sm:$0xff] }
 0x2c4   : > { %v2998_v15 = vpack.c.bf16 %v1334_v3, %v1333_v14  ;;  %v1338_v23 = vld [vmem:[#allocation6 + $0x168] sm:$0xff]  ;;  %v1465_v17 = vld [vmem:[%s3884_s8 + $0x60] sm:$0xff] }
 0x2da   : > { %v2570_v33 = vpop.f32.mrb[8].mxu1 }
 0x2db   : > { %v1079_v51 = vrot.slane %v2570_v33, 1  ;;  %v1059_v27 = vpop.f32.mrb[9].mxu1  ;;  %v1340_v33 = vld [vmem:[#allocation6 + $0x178] sm:$0xff] }
 0x2dc   : > { %v1078_v28 = vrot.slane %v1059_v27, 1  ;;  %v1453_v27 = vld [vmem:[%s3884_s8] sm:$0xff] }
 0x2de   : > { %v1084_v29 = vsel %vm733_vm0, %v1078_v28, %v1079_v51  ;;  %v2573_v34 = vpop.f32.mrb[10].mxu1 }
 0x2df   : > { %v1086_v36 = vadd.f32 %v1084_v29, %v972_v19  ;;  %v1081_v10 = vrot.slane %v2573_v34, 1  ;;  %v1069_v1 = vpop.f32.mrb[11].mxu1  ;;  %v1455_v29 = vld [vmem:[%s3884_s8 + $0x10] sm:$0xff] }
 0x2e0   : > { %v1080_v37 = vrot.slane %v1069_v1, 1  ;;  %v1458_v1 = vld [vmem:[%s3884_s8 + $0x28] sm:$0xff] }
 0x2e1   : > { %v1085_v39 = vsel %vm733_vm0, %v1081_v10, %v1078_v28  ;;  %v1097_v40 = vadd.f32 %v2137_v35, %v1086_v36  ;;  %v1454_v28 = vld [vmem:[%s3884_s8 + $0x8] sm:$0xff] }
 0x2e2   : > { %v1089_v41 = vadd.f32 %v1085_v39, %v975_v25  ;;  %v1082_v42 = vsel %vm733_vm0, %v1080_v37, %v1081_v10  ;;  %v1083_v45 = vsel %vm733_vm0, %v1079_v51, %v1080_v37  ;;  %v3006_v25 = vpack.c.bf16 %v1338_v23, %v1337_v24  ;;  %v1457_v10 = vld [vmem:[%s3884_s8 + $0x20] sm:$0xff]  ;;  %v1459_v39 = vld [vmem:[%s3884_s8 + $0x30] sm:$0xff] }
 0x2e3   : > { %v1087_v46 = vadd.f32 %v1083_v45, %v973_v12  ;;  %v1088_v47 = vadd.f32 %v1082_v42, %v974_v26  ;;  %v1101_v49 = vmul.f32 %v1097_v40, %v3483_v57  ;;  %v1332_v12 = vld [vmem:[#allocation6 + $0x138] sm:$0xff]  ;;  %v1339_v26 = vld [vmem:[#allocation6 + $0x170] sm:$0xff]  ;;  %v3014_v34 = vpack.c.bf16 %v1454_v28, %v1453_v27  ;;  %v1461_v42 = vld [vmem:[%s3884_s8 + $0x40] sm:$0xff] }
 0x2e4   : > { %v1100_v61 = vadd.f32 %v2137_v35, %v1089_v41  ;;  %v2994_v13 = vpack.c.bf16 %v1332_v12, %v1331_v11  ;;  %v3010_v51 = vpack.c.bf16 %v1340_v33, %v1339_v26  ;;  %v3022_v37 = vpack.c.bf16 %v1458_v1, %v1457_v10  ;;  %v1460_v40 = vld [vmem:[%s3884_s8 + $0x38] sm:$0xff]  ;;  %v1462_v45 = vld [vmem:[%s3884_s8 + $0x48] sm:$0xff]  ;;  %v2138_v10 = vld [vmem:[%s3883_s7] ss:$0 sm:$0xff] }
 0x2e5   : > { %v1098_v53 = vadd.f32 %v2137_v35, %v1087_v46  ;;  %2606 = vmatprep.mubr.f32.mxu0 %v1101_v49  ;;  %2644 = vmatprep.mubr.f32.mxu1 %v1101_v49  ;;  %v1099_v0 = vadd.f32 %v2137_v35, %v1088_v47  ;;  %v1456_v35 = vld [vmem:[%s3884_s8 + $0x18] sm:$0xff]  ;;  %v3026_v41 = vpack.c.bf16 %v1460_v40, %v1459_v39  ;;  %v1463_v47 = vld [vmem:[%s3884_s8 + $0x50] sm:$0xff] }
 0x2e6   : > { %v1104_v8 = vmul.f32 %v1100_v61, %v3495_v63  ;;  %v3018_v36 = vpack.c.bf16 %v1456_v35, %v1455_v29  ;;  %3015 = vmatprep.subr.bf16.mxu1 %v3014_v34  ;;  %v3030_v46 = vpack.c.bf16 %v1462_v45, %v1461_v42 }
 0x2e7   : > { %v1102_v55 = vmul.f32 %v1098_v53, %v3497_v5  ;;  %v1103_v58 = vmul.f32 %v1099_v0, %v3481_v56  ;;  %v1466_v53 = vld [vmem:[%s3884_s8 + $0x68] sm:$0xff] }
 0x2e8   : > { %v3038_v0 = vpack.c.bf16 %v1466_v53, %v1465_v17 }
 0x2e9   : > { %2607 = vmatmul.mubr.f32.vlgmr.msra.gmra.mrb[12].mxu0 %v1102_v55  ;;  %2645 = vmatmul.mubr.f32.vlgmr.msra.gmra.mrb[12].mxu1 %v1102_v55 }
 0x2ea   : > { %2985 = vmatpush3.bf16.msra.mxu0 %v2982_v54  ;;  %2609 = vmatprep.mubr.f32.mxu0 %v1103_v58  ;;  %v1335_v54 = vld [vmem:[#allocation6 + $0x150] sm:$0xff] }
 0x2eb   : > { %2647 = vmatprep.mubr.f32.mxu1 %v1103_v58  ;;  %2987 = vmatprep.subr.bf16.mxu0 %v2986_v60  ;;  %v3002_v19 = vpack.c.bf16 %v1336_v16, %v1335_v54 }
 0x2ec   : > { %3017 = vmatpush3.bf16.msra.mxu1 %v3014_v34 }
 0x2ed   : > { %2610 = vmatmul.mubr.f32.gmra.mrb[14].mxu0 %v1104_v8  ;;  %2648 = vmatmul.mubr.f32.gmra.mrb[14].mxu1 %v1104_v8 }
 0x2ee   : > { %2989 = vmatpush3.bf16.msra.mxu0 %v2986_v60  ;;  %2682 = vmatprep.mubr.f32.mxu0 %v1101_v49  ;;  %v1464_v49 = vld [vmem:[%s3884_s8 + $0x58] sm:$0xff] }
 0x2ef   : > { %2991 = vmatprep.subr.bf16.mxu0 %v2990_v9  ;;  %3019 = vmatprep.subr.bf16.mxu1 %v3018_v36  ;;  %v3034_v52 = vpack.c.bf16 %v1464_v49, %v1463_v47 }
 0x2f0   : > { %3021 = vmatpush3.bf16.msra.mxu1 %v3018_v36 }
 0x2f1   : > { %3023 = vmatprep.subr.bf16.mxu1 %v3022_v37 }
 0x2f2   : > { %2993 = vmatpush3.bf16.msra.mxu0 %v2990_v9 }
 0x2f3   : > { %2995 = vmatprep.subr.bf16.mxu0 %v2994_v13 }
 0x2f4   : > { %3025 = vmatpush3.bf16.msra.mxu1 %v3022_v37 }
 0x2f5   : > { %3027 = vmatprep.subr.bf16.mxu1 %v3026_v41 }
 0x2f6   : > { %2997 = vmatpush3.bf16.msra.mxu0 %v2994_v13 }
 0x2f7   : > { %2999 = vmatprep.subr.bf16.mxu0 %v2998_v15 }
 0x2f8   : > { %3029 = vmatpush3.bf16.msra.mxu1 %v3026_v41 }
 0x2f9   : > { %3031 = vmatprep.subr.bf16.mxu1 %v3030_v46 }
 0x2fa   : > { %3001 = vmatpush3.bf16.msra.mxu0 %v2998_v15 }
 0x2fb   : > { %3003 = vmatprep.subr.bf16.mxu0 %v3002_v19 }
 0x2fc   : > { %3033 = vmatpush3.bf16.msra.mxu1 %v3030_v46 }
 0x2fd   : > { %3035 = vmatprep.subr.bf16.mxu1 %v3034_v52 }
 0x2fe   : > { %3005 = vmatpush3.bf16.msra.mxu0 %v3002_v19 }
 0x2ff   : > { %3007 = vmatprep.subr.bf16.mxu0 %v3006_v25 }
 0x300   : > { %3037 = vmatpush3.bf16.msra.mxu1 %v3034_v52 }
 0x301   : > { %3039 = vmatprep.subr.bf16.mxu1 %v3038_v0 }
 0x302   : > { %3009 = vmatpush3.bf16.msra.mxu0 %v3006_v25 }
 0x303   : > { %3011 = vmatprep.subr.bf16.mxu0 %v3010_v51 }
 0x304   : > { %3041 = vmatpush3.bf16.msra.mxu1 %v3038_v0 }
 0x306   : > { %3013 = vmatpush3.bf16.msra.mxu0 %v3010_v51 }
 0x309   : > { %2683 = vmatmul.mubr.f32.vlgmr.msra.gmra.mrb[16].mxu0 %v1102_v55  ;;  %v1467_v55 = vld [vmem:[%s3884_s8 + $0x70] sm:$0xff] }
 0x30a   : > { %2685 = vmatprep.mubr.f32.mxu0 %v1103_v58  ;;  %v1468_v58 = vld [vmem:[%s3884_s8 + $0x78] sm:$0xff] }
 0x30b   : > { %v3042_v60 = vpack.c.bf16 %v1468_v58, %v1467_v55 }
 0x30d   : > { %2686 = vmatmul.mubr.f32.gmra.mrb[18].mxu0 %v1104_v8  ;;  %3043 = vmatprep.subr.bf16.mxu1 %v3042_v60 }
 0x30e   : > { %3045 = vmatpush3.bf16.msra.mxu1 %v3042_v60 }
 0x3bc   : > { %v2608_v61 = vpop.f32.mrb[12].mxu0  ;;  %v2646_v7 = vpop.f32.mrb[12].mxu1 }
 0x3bd   : > { %v1207_v30 = vrot.slane %v2608_v61, 7  ;;  %v1187_v8 = vpop.f32.mrb[13].mxu0  ;;  %v1301_v9 = vpop.f32.mrb[13].mxu1 }
 0x3be   : > { %v1206_v11 = vrot.slane %v1187_v8, 7 }
 0x3c0   : > { %v1212_v12 = vsel %vm512_vm3, %v1206_v11, %v1207_v30  ;;  %v2611_v13 = vpop.f32.mrb[14].mxu0  ;;  %v2649_v14 = vpop.f32.mrb[14].mxu1 }
 0x3c1   : > { %v1321_v3 = vadd.f32 %v2646_v7, %v1212_v12  ;;  %v1209_v15 = vrot.slane %v2611_v13, 7  ;;  %v1197_v54 = vpop.f32.mrb[15].mxu0  ;;  %v1311_v16 = vpop.f32.mrb[15].mxu1  ;;  %v3266_v7 = vmov 0   ;;  %v1649_v13 = vrot.slane %v3671_v4, 1 }
 0x3c2   : > { %v1208_v19 = vrot.slane %v1197_v54, 7  ;;  %3122 = vset.pattern.permute.xlu0 %v3266_v7  ;;  %3123 = vset.pattern.permute.xlu1 %v3266_v7  ;;  %v1654_v54 = vrot.slane %v3671_v4, 2  ;;  %v3270_v4 = vmov 1  }
 0x3c3   : > { %v1213_v24 = vsel %vm512_vm3, %v1209_v15, %v1206_v11 }
 0x3c4   : > { %v1320_v23 = vadd.f32 %v1301_v9, %v1213_v24  ;;  %v1210_v25 = vsel %vm512_vm3, %v1208_v19, %v1209_v15  ;;  %v1211_v26 = vsel %vm512_vm3, %v1207_v30, %v1208_v19  ;;  %v1653_v19 = vrot.slane %v3661_v22, 2  ;;  %v1646_v24 = vpop.permute.xlu0 %1645 }
 0x3c5   : > { %v1323_v33 = vadd.f32 %v2649_v14, %v1210_v25  ;;  %v1322_v51 = vadd.f32 %v1311_v16, %v1211_v26  ;;  %v1650_v26 = vrot.slane %v1646_v24, 1 }
 0x3c6   : > { %v1657_v25 = vsel %vm1619_vm1, %v1653_v19, %v1654_v54 }
 0x3dc   : > { %v2684_v27 = vpop.f32.mrb[16].mxu0 }
 0x3dd   : > { %v1427_v28 = vrot.slane %v2684_v27, 1  ;;  %v1407_v29 = vpop.f32.mrb[17].mxu0  ;;  %v3813_v27 = vld [vmem:[%s3877_s1] ss:$0 sm:$0xff] }
 0x3de   : > { %v1426_v34 = vrot.slane %v1407_v29, 1  ;;  %v3272_v29 = vmov 3  }
 0x3e0   : > { %v1432_v35 = vsel %vm733_vm0, %v1426_v34, %v1427_v28  ;;  %v2687_v36 = vpop.f32.mrb[18].mxu0 }
 0x3e1   : > { %v1434_v1 = vadd.f32 %v1432_v35, %v1320_v23  ;;  %v1429_v37 = vrot.slane %v2687_v36, 1  ;;  %v1417_v39 = vpop.f32.mrb[19].mxu0 }
 0x3e2   : > { %v1428_v40 = vrot.slane %v1417_v39, 1 }
 0x3e3   : > { %v1433_v41 = vsel %vm733_vm0, %v1429_v37, %v1426_v34  ;;  %v1445_v42 = vadd.f32 %v2138_v10, %v1434_v1 }
 0x3e4   : > { %v1437_v45 = vadd.f32 %v1433_v41, %v1323_v33  ;;  %v1430_v46 = vsel %vm733_vm0, %v1428_v40, %v1429_v37  ;;  %v1431_v47 = vsel %vm733_vm0, %v1427_v28, %v1428_v40  ;;  %v1951_v33 = vmul.f32 %v3659_v20, %v1657_v25  ;;  %v1733_v37 = vpop.permute.xlu1 %1732 }
 0x3e5   : > { %v1435_v49 = vadd.f32 %v1431_v47, %v1321_v3  ;;  %v1436_v52 = vadd.f32 %v1430_v46, %v1322_v51  ;;  %v1449_v17 = vmul.f32 %v1445_v42, %v3483_v57  ;;  %v1648_v3 = vrot.slane %v3661_v22, 1 }
 0x3e6   : > { %v1448_v60 = vadd.f32 %v2138_v10, %v1437_v45  ;;  %v3808_v51 = vsel %vm733_vm0, %v1649_v13, %v1650_v26  ;;  %v1655_v28 = vrot.slane %v1646_v24, 2  ;;  %v1735_v40 = vmul.f32 %v1733_v37, %v3503_v2 }
 0x3e7   : > { %v1446_v53 = vadd.f32 %v2138_v10, %v1435_v49  ;;  %2720 = vmatprep.mubr.f32.mxu1 %v1449_v17  ;;  %v1447_v0 = vadd.f32 %v2138_v10, %v1436_v52  ;;  %v3796_v16 = vsel %vm733_vm0, %v1648_v3, %v1649_v13  ;;  %v1916_v34 = vmul.f32 %v3657_v18, %v3808_v51  ;;  %v1809_v10 = vpop.permute.xlu0 %1808 }
 0x3e8   : > { %v1452_v61 = vmul.f32 %v1448_v60, %v3495_v63  ;;  %v1915_v23 = vmul.f32 %v3657_v18, %v3796_v16  ;;  %v1656_v35 = vsel %vm1619_vm1, %v1654_v54, %v1655_v28  ;;  %v1812_v1 = vmul.f32 %v1809_v10, %v3493_v62  ;;  %v1887_v41 = vpop.permute.xlu1 %1886 }
 0x3e9   : > { %v1450_v55 = vmul.f32 %v1446_v53, %v3497_v5  ;;  %v1451_v58 = vmul.f32 %v1447_v0, %v3481_v56  ;;  %v1952_v36 = vmul.f32 %v3659_v20, %v1656_v35  ;;  %v3273_v18 = vmov 7  }
 0x3ea   : > { %v1736_v20 = vmul.f32 %v1733_v37, %v3493_v62  ;;  %v1811_v39 = vmul.f32 %v1809_v10, %v3503_v2  ;;  %v1889_v26 = vmul.f32 %v1887_v41, %v3503_v2 }
 0x3eb   : > { %2721 = vmatmul.mubr.f32.vlgmr.msra.gmra.mrb[16].mxu1 %v1450_v55  ;;  %v1752_v42 = vpop.permute.xlu0 %1751 }
 0x3ec   : > { %2723 = vmatprep.mubr.f32.mxu1 %v1451_v58  ;;  %v1750_v45 = vpop.permute.xlu1 %1749  ;;  %v1756_v13 = vmul.f32 %v1752_v42, %v3572_v50 }
 0x3ef   : > { %2724 = vmatmul.mubr.f32.gmra.mrb[18].mxu1 %v1452_v61  ;;  %v1966_v46 = vpop.permute.xlu0 %1965 }
 0x3f0   : > { %v1968_v47 = vpop.permute.xlu1 %1967 }
 0x3f1   : > { %v1972_v25 = vmul.f32 %v1968_v47, %v3549_v32 }
 0x3f4   : > { %v1866_v49 = vpop.permute.xlu1 %1865 }
 0x4be   : > { %v2722_v30 = vpop.f32.mrb[16].mxu1 }
 0x4bf   : > { %v1555_v8 = vrot.slane %v2722_v30, 7  ;;  %v1535_v9 = vpop.f32.mrb[17].mxu1  ;;  %1572 = vrot.lane.b32.xlu1 %v2722_v30, %s3267_s24  ;;  %1563 = vrot.lane.b32.xlu0 %v2722_v30, %s3268_s28 }
 0x4c0   : > { %v1554_v57 = vrot.slane %v1535_v9, 7 }
 0x4c2   : > { %v2725_v11 = vpop.f32.mrb[18].mxu1  ;;  %v3785_v12 = vsel %vm512_vm3, %v1554_v57, %v1555_v8 }
 0x4c3   : > { %v1545_v63 = vpop.f32.mrb[19].mxu1  ;;  %1576 = vrot.lane.b32.xlu1 %v2725_v11, %s3267_s24 }
 0x4c4   : > { %v1556_v14 = vrot.slane %v1545_v63, 7  ;;  %1574 = vrot.lane.b32.xlu0 %v1545_v63, %s3267_s24 }
 0x4c6   : > { %v3791_v15 = vsel %vm512_vm3, %v1555_v8, %v1556_v14 }
 0x4c7   : > { %1565 = vrot.lane.b32.xlu1 %v1545_v63, %s3268_s28  ;;  %v1755_v63 = vmul.f32 %v1750_v45, %v3566_v48 }
 0x4c8   : > { %1976 = vperm.xlu0 %3122, %v3531_v21  }
 0x4cb   : > { %1980 = vperm.xlu1 %3123, %v3549_v32   ;;  %v3274_v32 = vmov 19  }
 0x4cc   : > { %1919 = vrot.lane.b32.xlu0 %v1915_v23, %s3269_s29  ;;  %v1971_v23 = vmul.f32 %v1966_v46, %v3531_v21 }
 0x4cd   : > { %3125 = vset.pattern.permute.xlu0 %v3270_v4 }
 0x4cf   : > { %1995 = vrot.lane.b32.xlu1 %v3813_v27, %s3271_s27 }
 0x4d0   : > { %1955 = vrot.lane.b32.xlu0 %v1951_v33, %s3269_s29  ;;  %3124 = vset.pattern.permute.xlu1 %v3272_v29 }
 0x4d3   : > { %1921 = vrot.lane.b32.xlu1 %v1916_v34, %s3269_s29 }
 0x4d4   : > { %1782 = vperm.xlu0 %3125, %v3813_v27  }
 0x4d7   : > { %1957 = vrot.lane.b32.xlu1 %v1952_v36, %s3269_s29 }
 0x4d8   : > { %3126 = vset.pattern.permute.xlu0 %v3266_v7 }
 0x4d9   : > { %1678 = vperm.xlu0 %3126, %v3813_v27  }
 0x4db   : > { %1706 = vperm.xlu1 %3124, %v3813_v27  }
 0x4dd   : > { %1760 = vperm.xlu0 %3126, %v3566_v48  }
 0x4df   : > { %3127 = vset.pattern.permute.xlu1 %v3273_v18 }
 0x4e0   : > { %1844 = vperm.xlu1 %3127, %v3813_v27  }
 0x4e1   : > { %1817 = vrot.lane.b32.xlu0 %v1812_v1, %s3261_s23  ;;  %v1890_v1 = vmul.f32 %v1887_v41, %v3493_v62 }
 0x4e4   : > { %1625 = vrot.lane.b32.xlu1 %v3487_v59, %s3261_s23  ;;  %v1864_v59 = vpop.permute.xlu0 %1863 }
 0x4e5   : > { %1741 = vrot.lane.b32.xlu0 %v1736_v20, %s3261_s23  ;;  %3128 = vset.pattern.permute.xlu1 %v3266_v7 }
 0x4e8   : > { %1764 = vperm.xlu1 %3128, %v3572_v50  }
 0x4ec   : > { %1815 = vrot.lane.b32.xlu1 %v1811_v39, %s3261_s23 }
 0x4f0   : > { %1739 = vrot.lane.b32.xlu1 %v1735_v40, %s3261_s23 }
 0x531   : > { %v1573_v52 = vpop.permute.xlu1 %1572  ;;  %v1564_v17 = vpop.permute.xlu0 %1563 }
 0x532   : > { %v1581_v60 = vrot.slane %v1573_v52, 1  ;;  %v1569_v8 = vadd.f32 %v1564_v17, %v3785_v12 }
 0x535   : > { %v1577_v53 = vpop.permute.xlu1 %1576 }
 0x536   : > { %v1575_v0 = vpop.permute.xlu0 %1574  ;;  %v1583_v61 = vrot.slane %v1577_v53, 1 }
 0x537   : > { %v1582_v55 = vrot.slane %v1575_v0, 1 }
 0x539   : > { %v1566_v58 = vpop.permute.xlu1 %1565  ;;  %v1585_v30 = vsel %vm733_vm0, %v1581_v60, %v1582_v55  ;;  %v1584_v9 = vsel %vm733_vm0, %v1582_v55, %v1583_v61 }
 0x53a   : > { %v1570_v7 = vadd.f32 %v1566_v58, %v3791_v15  ;;  %v1586_v57 = vadd.f32 %v1585_v30, %v1569_v8 }
 0x53c   : > { %v1587_v11 = vadd.f32 %v1584_v9, %v1570_v7  ;;  %v1757_v3 = vadd.f32 %v1755_v63, %v1586_v57 }
 0x53e   : > { %v1758_v14 = vadd.f32 %v1756_v13, %v1587_v11  ;;  %v1869_v19 = vadd.f32 %v1864_v59, %v1757_v3 }
 0x540   : > { %v1870_v24 = vadd.f32 %v1866_v49, %v1758_v14  ;;  %v1973_v4 = vadd.f32 %v1971_v23, %v1869_v19 }
 0x542   : > { %v1974_v33 = vadd.f32 %v1972_v25, %v1870_v24 }
 0x547   : > { %v1977_v54 = vpop.permute.xlu0 %1976 }
 0x54a   : > { %v1981_v15 = vpop.permute.xlu1 %1980 }
 0x54b   : > { %v1920_v12 = vpop.permute.xlu0 %1919 }
 0x54c   : > { %v1925_v28 = vadd.f32 %v1920_v12, %v1889_v26 }
 0x54e   : > { %v1996_v29 = vpop.permute.xlu1 %1995 }
 0x54f   : > { %v1998_v50 = vadd.f32 %v1996_v29, %v1973_v4  ;;  %v1999_v34 = vadd.f32 %v1996_v29, %v1974_v33  ;;  %v1956_v48 = vpop.permute.xlu0 %1955 }
 0x550   : > { %v1961_v35 = vadd.f32 %v1956_v48, %v1925_v28 }
 0x551   : > { %2002 = vperm.xlu1 %3128, %v1998_v50   ;;  %2007 = vperm.xlu0 %3126, %v1999_v34  }
 0x552   : > { %v1983_v36 = vmul.f32 %v1977_v54, %v1961_v35  ;;  %v1922_v10 = vpop.permute.xlu1 %1921 }
 0x553   : > { %v1783_v21 = vpop.permute.xlu0 %1782  ;;  %v1926_v18 = vadd.f32 %v1922_v10, %v1890_v1 }
 0x554   : > { %v1786_v46 = vmul.f32 %v1783_v21, %v3681_v43 }
 0x555   : > { %3129 = vset.pattern.permute.xlu1 %v3274_v32  ;;  %1987 = vrot.lane.b32.xlu0 %v1983_v36, %s3261_s23 }
 0x556   : > { %v1958_v2 = vpop.permute.xlu1 %1957  ;;  %2015 = vperm.xlu1 %3129, %v3813_v27   ;;  %3130 = vset.pattern.permute.xlu0 %v3274_v32 }
 0x557   : > { %v1962_v37 = vadd.f32 %v1958_v2, %v1926_v18 }
 0x558   : > { %v1679_v20 = vpop.permute.xlu0 %1678 }
 0x559   : > { %v1984_v39 = vmul.f32 %v1981_v15, %v1962_v37  ;;  %v1682_v42 = vmul.f32 %v1679_v20, %v3687_v44 }
 0x55a   : > { %v1707_v40 = vpop.permute.xlu1 %1706 }
 0x55b   : > { %v1710_v45 = vmul.f32 %v1707_v40, %v3681_v43  ;;  %1989 = vrot.lane.b32.xlu1 %v1984_v39, %s3261_s23  ;;  %s2145_s23 = sshll.u32 %s3897_s10, 4 }
 0x55c   : > { %v1761_v62 = vpop.permute.xlu0 %1760  ;;  %s376_s17 = scalar_lea.vmem %s3885_s9, %s2145_s23 }
 0x55d   : > { %v1712_v41 = vadd.f32 %v1710_v45, %v1682_v42 }
 0x55f   : > { %v1845_v47 = vpop.permute.xlu1 %1844 }
 0x560   : > { %v1848_v49 = vmul.f32 %v1845_v47, %v3808_v51  ;;  %v1818_v59 = vpop.permute.xlu0 %1817  ;;  %v1847_v14 = vmul.f32 %v1845_v47, %v3796_v16 }
 0x561   : > { %v1822_v27 = vadd.f32 %v1818_v59, %v1786_v46 }
 0x563   : > { %v1626_v52 = vpop.permute.xlu1 %1625  ;;  %v1850_v17 = vadd.f32 %v1848_v49, %v1822_v27 }
 0x564   : > { %v1742_v53 = vpop.permute.xlu0 %1741  ;;  %v1634_v61 = vrot.slane %v1626_v52, 6  ;;  %v1639_v7 = vrot.slane %v1626_v52, 7 }
 0x565   : > { %v1746_v0 = vadd.f32 %v1742_v53, %v1712_v41  ;;  %v1872_v44 = vmul.f32 %v1850_v17, %v3481_v56 }
 0x566   : > { %v1643_v43 = vsel %vm512_vm3, %v1639_v7, %v1640_v38  ;;  %v1638_v51 = vsel %vm1600_vm2, %v1634_v61, %v1635_v31 }
 0x567   : > { %v1765_v55 = vpop.permute.xlu1 %1764  ;;  %v1709_v8 = vmul.f32 %v1707_v40, %v1643_v43  ;;  %v1681_v9 = vmul.f32 %v1679_v20, %v1638_v51  ;;  %v1785_v57 = vmul.f32 %v1783_v21, %v1643_v43 }
 0x568   : > { %v1768_v58 = vmul.f32 %v1765_v55, %v1746_v0 }
 0x569   : > { %v1711_v63 = vadd.f32 %v1709_v8, %v1681_v9 }
 0x56a   : > { %v1874_v60 = vadd.f32 %v1872_v44, %v1768_v58 }
 0x56b   : > { %v1816_v30 = vpop.permute.xlu1 %1815 }
 0x56c   : > { %v1821_v13 = vadd.f32 %v1816_v30, %v1785_v57 }
 0x56e   : > { %v1849_v54 = vadd.f32 %v1847_v14, %v1821_v13 }
 0x56f   : > { %v1740_v11 = vpop.permute.xlu1 %1739 }
 0x570   : > { %v1745_v3 = vadd.f32 %v1740_v11, %v1711_v63  ;;  %v1871_v38 = vmul.f32 %v1849_v54, %v3497_v5 }
 0x572   : > { %v1767_v19 = vmul.f32 %v1761_v62, %v1745_v3 }
 0x574   : > { %v1873_v23 = vadd.f32 %v1871_v38, %v1767_v19 }
 0x5d0   : > { %v2003_v24 = vpop.permute.xlu1 %2002  ;;  %v2008_v15 = vpop.permute.xlu0 %2007 }
 0x5d4   : > { %v1988_v22 = vpop.permute.xlu0 %1987 }
 0x5d5   : > { %v1993_v25 = vadd.f32 %v1988_v22, %v1873_v23  ;;  %v2016_v6 = vpop.permute.xlu1 %2015 }
 0x5d7   : > { %v2010_v31 = vadd.f32 %v2003_v24, %v1993_v25 }
 0x5d9   : > { %v2012_v12 = vmul.f32 %v2010_v31, %v3497_v5  ;;  %v1990_v26 = vpop.permute.xlu1 %1989 }
 0x5da   : > { %v1994_v4 = vadd.f32 %v1990_v26, %v1874_v60 }
 0x5db   : > { %v2018_v33 = vadd.f32 %v2016_v6, %v2012_v12 }
 0x5dc   : > { %v2011_v28 = vadd.f32 %v2008_v15, %v1994_v4 }
 0x5dd   : > { %v2140_v16 = vmul.f32 -1.442695, %v2018_v33 }
 0x5de   : > { %v2013_v29 = vmul.f32 %v2011_v28, %v3481_v56 }
 0x5df   : > { %3131 = vpow2.f32 %v2140_v16 }
 0x5e0   : > { %v2019_v50 = vadd.f32 %v2016_v6, %v2013_v29 }
 0x5e2   : > { %v2141_v34 = vmul.f32 -1.442695, %v2019_v50 }
 0x5e4   : > { %3133 = vpow2.f32 %v2141_v34 }
 0x5e9   : > { %v3132_v48 = vpop.eup %3131 }
 0x5ea   : > { %v2026_v35 = vadd.f32 1.0, %v3132_v48 }
 0x5ec   : > { %3135 = vrcp.f32 %v2026_v35 }
 0x5ee   : > { %v3134_v36 = vpop.eup %3133 }
 0x5ef   : > { %v2027_v10 = vadd.f32 1.0, %v3134_v36 }
 0x5f1   : > { %3137 = vrcp.f32 %v2027_v10 }
 0x5f6   : > { %v3136_v5 = vpop.eup %3135 }
 0x5f7   : > { %2033 = vst.msk [vmem:[%s376_s17] sm:$0xff] %vm2032_vm4, %v3136_v5 }
 0x5fb   : > { %v3138_v1 = vpop.eup %3137 }
 0x5fc   : > { %2034 = vst.msk [vmem:[%s376_s17 + $0x8] sm:$0xff] %vm2032_vm4, %v3138_v1 }
 0x5fd PF: > { %s21_s30 = sadd.s32 1, %s3240_s30  }
 0x5fe   : > { %p18_p5 = scmp.ge.s32.totalorder %s21_s30, 4  }
 0x600   :  { %20 = sbr.rel (!%p18_p5) target bundleno = 2 (0x2), region = 105 }
 0x607   :  { %2056 = vsyncpa [#allocation3], 1 }
 0x608   :  { %2058 = vsyncpa [#allocation3 + $0x1], 1 }
 0x609   :  { %2059 = vsyncpa [#allocation5], 1 }

</bundles_post_ra>
